<compile_context>
chip_gen: v7x
topology: tpu7x:2x2x1
jax: 0.10.0
libtpu: 0.0.40
codegen_flags: <defaults>
</compile_context>

<pallas_src>
import functools
import math

import jax
import jax.numpy as jnp
from jax import lax
from jax.experimental import pallas as pl
from jax.experimental.pallas import tpu as pltpu

P_ASSETS = 30   # fixed by nn.Linear(30, 50) / Softmax(dim=1) in the module
HIDDEN = 50


def _subnetwork_kernel(x1_ref, prev_r_ref, z_ref, chol_t_ref, alpha_ref,
                       a_t_ref, w1_ref, w2_ref, w3_ref,
                       wealth_ref, r_out_ref,
                       *, lb, ub, rf, max_rebalance_iters):
    f32 = jnp.float32
    prev_r = prev_r_ref[...]                      # [B, P]

    # epsilon[b] ~ N(0, cov):  eps = z @ chol^T   (fused: MXU is otherwise idle)
    eps = jnp.dot(z_ref[...], chol_t_ref[...], preferred_element_type=f32)

    # R[b] = alpha + A @ prev_R[b] + eps[b]   ==   prev_R @ A^T + alpha + eps
    r = (alpha_ref[...] +
         jnp.dot(prev_r, a_t_ref[...], preferred_element_type=f32) +
         eps)                                     # [B, P]

    # Subnetwork: Linear(30,50) -> tanh -> Linear(50,50) -> tanh
    #             -> Linear(50,30) -> tanh -> softmax(dim=1)
    h = jnp.tanh(jnp.dot(r, w1_ref[...], preferred_element_type=f32))
    h = jnp.tanh(jnp.dot(h, w2_ref[...], preferred_element_type=f32))
    h = jnp.tanh(jnp.dot(h, w3_ref[...], preferred_element_type=f32))
    m = jnp.max(h, axis=1, keepdims=True)
    e = jnp.exp(h - m)
    sum_e = jnp.sum(e, axis=1, keepdims=True)
    weights = e * pl.reciprocal(sum_e, approx=True)     # softmax, EUP recip

    b = weights.shape[0]

    # rebalance(): clamp to [lb, ub], redistribute the clipped mass across the
    # positions not pinned at ub, repeat until no element exceeds ub.
    # Vectorized over the batch; one pass is an exact no-op for rows that have
    # already converged (leftover == 0 and nothing above ub), so a fixed
    # iteration cap that exceeds the worst-case pass count reproduces the
    # per-row do/while loop exactly.
    old0 = weights
    new0 = jnp.clip(weights, lb, ub)

    def one_pass(_, carry):
        old, new = carry
        mask = (new != ub).astype(f32)                       # [B, P]
        masked = new * mask
        # Merge the two row-sums into one XLU pass: [2B, P] -> [2B, 1].
        stacked = jnp.concatenate([old - new, masked], axis=0)
        sums = jnp.sum(stacked, axis=1, keepdims=True)       # [2B, 1]
        leftover = sums[:b]                                  # [B, 1]
        denom = sums[b:]                                     # [B, 1]
        safe = jnp.where(denom == 0.0, 1.0, denom)
        scale = jnp.where(denom == 0.0, 0.0,
                          leftover * pl.reciprocal(safe, approx=False))
        new = new + scale * masked
        old = new
        over = jnp.max(new, axis=1, keepdims=True) > ub      # [B, 1]
        new = jnp.where(over, jnp.clip(new, lb, ub), new)
        return (old, new)

    _, output = lax.fori_loop(0, max_rebalance_iters, one_pass, (old0, new0),
                              unroll=True)

    # updated_wealth[b] = x1[b] * Rf * sum_p output[b,p] * (1 + R[b,p])
    wealth = (x1_ref[...] * rf *
              jnp.sum(output * (1.0 + r), axis=1, keepdims=True))   # [B, 1]

    wealth_ref[...] = wealth
    r_out_ref[...] = r


def subnetwork_forward(x1, prev_r, z, chol_t, alpha_row, a_t, w1_t, w2_t, w3_t,
                       *, lb, ub, rf, max_rebalance_iters):
    """One Subnetwork.forward; all tensors float32, already laid out [in,out]."""
    b, p = prev_r.shape
    kernel = functools.partial(
        _subnetwork_kernel, lb=float(lb), ub=float(ub), rf=float(rf),
        max_rebalance_iters=int(max_rebalance_iters))

    vmem = pl.BlockSpec(memory_space=pltpu.MemorySpace.VMEM)
    wealth, r_out = pl.pallas_call(
        kernel,
        out_shape=(jax.ShapeDtypeStruct((b, 1), jnp.float32),
                   jax.ShapeDtypeStruct((b, p), jnp.float32)),
        in_specs=[vmem] * 9,
        out_specs=(vmem, vmem),
    )(x1.reshape(b, 1), prev_r, z, chol_t, alpha_row, a_t, w1_t, w2_t, w3_t)
    return wealth[:, 0], r_out


def _torch_linear_weight(key, out_features, in_features):
    # torch.nn.Linear default init: U(-1/sqrt(fan_in), 1/sqrt(fan_in))
    bound = 1.0 / jnp.sqrt(jnp.float32(in_features))
    return jax.random.uniform(key, (out_features, in_features),
                              jnp.float32, -bound, bound)


class PortfolioModelPallas:
    """JAX/Pallas re-implementation of PortfolioModel (K StackLayers, each one
    Subnetwork). Randomness (np.random.multivariate_normal) is made
    deterministic via jax.random + a cholesky factor of `cov`."""

    def __init__(self, p, cov, k, lb, ub, rf, batch_size, alpha, a_mat, key):
        assert p == P_ASSETS, "Subnetwork hard-codes 30 assets (Linear(30,...))"
        self.p, self.k = p, k
        self.lb, self.ub, self.rf = float(lb), float(ub), float(rf)
        self.batch_size = batch_size

        # Constant prep hoisted out of the call path.
        self.alpha_row = jnp.asarray(alpha, jnp.float32).reshape(1, p)
        self.a_t = jnp.asarray(a_mat, jnp.float32).T           # prev_R @ A^T
        chol = jnp.linalg.cholesky(jnp.asarray(cov, jnp.float32))
        self.chol_t = chol.T                                    # eps = z @ L^T

        self.layers = []
        for i in range(k):
            k1, k2, k3, key = jax.random.split(jax.random.fold_in(key, i), 4)
            w1 = _torch_linear_weight(k1, HIDDEN, P_ASSETS)     # Linear(30,50)
            w2 = _torch_linear_weight(k2, HIDDEN, HIDDEN)       # Linear(50,50)
            w3 = _torch_linear_weight(k3, P_ASSETS, HIDDEN)     # Linear(50,30)
            # store transposed [in, out] so the kernel does plain x @ W
            self.layers.append((w1.T, w2.T, w3.T))

        # Rebalance-pass cap: each clip-triggering pass pins >=1 new weight at
        # ub and at most floor(1/ub) weights fit at ub, so ceil(1/ub)+3 passes
        # always suffice for lb<=0<ub (16 for ub=0.08). Fall back to P+8.
        if self.lb <= 0.0 < self.ub:
            self.max_rebalance_iters = min(p + 2,
                                           int(math.ceil(1.0 / self.ub)) + 3)
        else:
            self.max_rebalance_iters = p + 8

        self._jit_forward = jax.jit(self._forward)

    def _forward(self, input1, input2, key):
        # PortfolioModel.forward applies every stack layer to the SAME
        # (input1, input2) and returns only the LAST layer's result; the first
        # K-1 layers are dead compute, so only the last is executed here
        # (identical outputs, K x fewer launches).
        i = self.k - 1
        w1_t, w2_t, w3_t = self.layers[i]
        z = jax.random.normal(jax.random.fold_in(key, i),
                              (self.batch_size, self.p), jnp.float32)
        x1 = jnp.asarray(input1, jnp.float32)
        x2 = jnp.asarray(input2, jnp.float32)
        return subnetwork_forward(
            x1, x2, z, self.chol_t, self.alpha_row, self.a_t,
            w1_t, w2_t, w3_t,
            lb=self.lb, ub=self.ub, rf=self.rf,
            max_rebalance_iters=self.max_rebalance_iters)

    def __call__(self, input1, input2, key):
        return self._jit_forward(input1, input2, key)


if __name__ == "__main__":
    key = jax.random.PRNGKey(0)
    k_a, k_cov, k_alpha, k_x2, k_model, k_eps = jax.random.split(key, 6)

    P = P_ASSETS           # 30, fixed by the module
    B = 8                  # batch_size
    K = 2                  # number of stack layers
    lb, ub, Rf = 0.0, 0.08, 1.03

    a_mat = 0.1 * jax.random.normal(k_a, (P, P), jnp.float32) / jnp.sqrt(P * 1.0)
    m = 0.05 * jax.random.normal(k_cov, (P, P), jnp.float32)
    cov = m @ m.T / P + 0.01 * jnp.eye(P, dtype=jnp.float32)
    alpha = 0.01 * jax.random.normal(k_alpha, (P,), jnp.float32)

    input1 = jnp.ones((B,), jnp.float32)                          # wealth
    input2 = 0.02 * jax.random.normal(k_x2, (B, P), jnp.float32)  # prev returns

    model = PortfolioModelPallas(P, cov, K, lb, ub, Rf, B, alpha, a_mat, k_model)
    updated_wealth, updated_return = model(input1, input2, k_eps)
    jax.block_until_ready((updated_wealth, updated_return))

    assert updated_wealth.shape == (B,)
    assert updated_return.shape == (B, P)
    assert bool(jnp.all(jnp.isfinite(updated_wealth)))
    assert bool(jnp.all(jnp.isfinite(updated_return)))
    print("KERNEL_OK")
</pallas_src>

<mosaic_0001>
module attributes {stable_mosaic.version = 11 : i64} {
  func.func @_subnetwork_kernel(%arg0: memref<8x1xf32, #tpu.memory_space<vmem>>, %arg1: memref<8x30xf32, #tpu.memory_space<vmem>>, %arg2: memref<8x30xf32, #tpu.memory_space<vmem>>, %arg3: memref<30x30xf32, #tpu.memory_space<vmem>>, %arg4: memref<1x30xf32, #tpu.memory_space<vmem>>, %arg5: memref<30x30xf32, #tpu.memory_space<vmem>>, %arg6: memref<30x50xf32, #tpu.memory_space<vmem>>, %arg7: memref<50x50xf32, #tpu.memory_space<vmem>>, %arg8: memref<50x30xf32, #tpu.memory_space<vmem>>, %arg9: memref<8x1xf32, #tpu.memory_space<vmem>>, %arg10: memref<8x30xf32, #tpu.memory_space<vmem>>) attributes {dimension_semantics = [], scalar_prefetch = 0 : i64, scratch_operands = 0 : i64, tpu.core_type = #tpu.core_type<tc>} {
    %c0 = arith.constant 0 : index
    %c0_0 = arith.constant 0 : index
    %0 = vector.load %arg1[%c0, %c0_0] : memref<8x30xf32, #tpu.memory_space<vmem>>, vector<8x30xf32>
    %c0_1 = arith.constant 0 : index
    %c0_2 = arith.constant 0 : index
    %1 = vector.load %arg2[%c0_1, %c0_2] : memref<8x30xf32, #tpu.memory_space<vmem>>, vector<8x30xf32>
    %c0_3 = arith.constant 0 : index
    %c0_4 = arith.constant 0 : index
    %2 = vector.load %arg3[%c0_3, %c0_4] : memref<30x30xf32, #tpu.memory_space<vmem>>, vector<30x30xf32>
    %cst = arith.constant dense<0.000000e+00> : vector<8x30xf32>
    %3 = tpu.matmul %1, %2, %cst {dimension_numbers = #tpu.dot_dimension_numbers<[1], [0], [0], [1], [0, 0, 1, 1], [], []>} : vector<8x30xf32>, vector<30x30xf32>, vector<8x30xf32> -> vector<8x30xf32>
    %c0_5 = arith.constant 0 : index
    %c0_6 = arith.constant 0 : index
    %4 = vector.load %arg4[%c0_5, %c0_6] : memref<1x30xf32, #tpu.memory_space<vmem>>, vector<1x30xf32>
    %c0_7 = arith.constant 0 : index
    %c0_8 = arith.constant 0 : index
    %5 = vector.load %arg5[%c0_7, %c0_8] : memref<30x30xf32, #tpu.memory_space<vmem>>, vector<30x30xf32>
    %cst_9 = arith.constant dense<0.000000e+00> : vector<8x30xf32>
    %6 = tpu.matmul %0, %5, %cst_9 {dimension_numbers = #tpu.dot_dimension_numbers<[1], [0], [0], [1], [0, 0, 1, 1], [], []>} : vector<8x30xf32>, vector<30x30xf32>, vector<8x30xf32> -> vector<8x30xf32>
    %7 = vector.broadcast %4 : vector<1x30xf32> to vector<8x30xf32>
    %8 = arith.addf %7, %6 : vector<8x30xf32>
    %9 = arith.addf %8, %3 : vector<8x30xf32>
    %c0_10 = arith.constant 0 : index
    %c0_11 = arith.constant 0 : index
    %10 = vector.load %arg6[%c0_10, %c0_11] : memref<30x50xf32, #tpu.memory_space<vmem>>, vector<30x50xf32>
    %cst_12 = arith.constant dense<0.000000e+00> : vector<8x50xf32>
    %11 = tpu.matmul %9, %10, %cst_12 {dimension_numbers = #tpu.dot_dimension_numbers<[1], [0], [0], [1], [0, 0, 1, 1], [], []>} : vector<8x30xf32>, vector<30x50xf32>, vector<8x50xf32> -> vector<8x50xf32>
    %12 = math.tanh %11 : vector<8x50xf32>
    %c0_13 = arith.constant 0 : index
    %c0_14 = arith.constant 0 : index
    %13 = vector.load %arg7[%c0_13, %c0_14] : memref<50x50xf32, #tpu.memory_space<vmem>>, vector<50x50xf32>
    %cst_15 = arith.constant dense<0.000000e+00> : vector<8x50xf32>
    %14 = tpu.matmul %12, %13, %cst_15 {dimension_numbers = #tpu.dot_dimension_numbers<[1], [0], [0], [1], [0, 0, 1, 1], [], []>} : vector<8x50xf32>, vector<50x50xf32>, vector<8x50xf32> -> vector<8x50xf32>
    %15 = math.tanh %14 : vector<8x50xf32>
    %c0_16 = arith.constant 0 : index
    %c0_17 = arith.constant 0 : index
    %16 = vector.load %arg8[%c0_16, %c0_17] : memref<50x30xf32, #tpu.memory_space<vmem>>, vector<50x30xf32>
    %cst_18 = arith.constant dense<0.000000e+00> : vector<8x30xf32>
    %17 = tpu.matmul %15, %16, %cst_18 {dimension_numbers = #tpu.dot_dimension_numbers<[1], [0], [0], [1], [0, 0, 1, 1], [], []>} : vector<8x50xf32>, vector<50x30xf32>, vector<8x30xf32> -> vector<8x30xf32>
    %18 = math.tanh %17 : vector<8x30xf32>
    %cst_19 = arith.constant dense<0xFF800000> : vector<8xf32>
    %19 = vector.multi_reduction <maximumf>, %18, %cst_19 [1] : vector<8x30xf32> to vector<8xf32>
    %20 = vector.shape_cast %19 : vector<8xf32> to vector<8x1xf32>
    %21 = vector.broadcast %20 : vector<8x1xf32> to vector<8x30xf32>
    %22 = arith.subf %18, %21 : vector<8x30xf32>
    %23 = math.exp %22 : vector<8x30xf32>
    %cst_20 = arith.constant dense<0.000000e+00> : vector<8xf32>
    %24 = vector.multi_reduction <add>, %23, %cst_20 [1] : vector<8x30xf32> to vector<8xf32>
    %25 = vector.shape_cast %24 : vector<8xf32> to vector<8x1xf32>
    %26 = tpu.reciprocal %25 {approx = true} : vector<8x1xf32> -> vector<8x1xf32>
    %27 = vector.broadcast %26 : vector<8x1xf32> to vector<8x30xf32>
    %28 = arith.mulf %23, %27 : vector<8x30xf32>
    %cst_21 = arith.constant 0.000000e+00 : f32
    %cst_22 = arith.constant 8.000000e-02 : f32
    %29 = vector.broadcast %cst_21 : f32 to vector<8x30xf32>
    %30 = arith.maximumf %29, %28 : vector<8x30xf32>
    %31 = vector.broadcast %cst_22 : f32 to vector<8x30xf32>
    %32 = arith.minimumf %31, %30 : vector<8x30xf32>
    %c0_i32 = arith.constant 0 : i32
    %cst_23 = arith.constant 8.000000e-02 : f32
    %33 = vector.broadcast %cst_23 : f32 to vector<8x30xf32>
    %34 = arith.cmpf one, %32, %33 : vector<8x30xf32>
    %35 = arith.extui %34 : vector<8x30xi1> to vector<8x30xi32>
    %36 = arith.sitofp %35 : vector<8x30xi32> to vector<8x30xf32>
    %37 = arith.mulf %32, %36 : vector<8x30xf32>
    %38 = arith.subf %28, %32 : vector<8x30xf32>
    %39 = tpu.concatenate %38, %37 in 0 : vector<8x30xf32>, vector<8x30xf32> -> vector<16x30xf32>
    %cst_24 = arith.constant dense<0.000000e+00> : vector<16xf32>
    %40 = vector.multi_reduction <add>, %39, %cst_24 [1] : vector<16x30xf32> to vector<16xf32>
    %41 = vector.shape_cast %40 : vector<16xf32> to vector<16x1xf32>
    %42 = vector.extract_strided_slice %41 {offsets = [0, 0], sizes = [8, 1], strides = [1, 1]} : vector<16x1xf32> to vector<8x1xf32>
    %43 = vector.extract_strided_slice %41 {offsets = [8, 0], sizes = [8, 1], strides = [1, 1]} : vector<16x1xf32> to vector<8x1xf32>
    %cst_25 = arith.constant 0.000000e+00 : f32
    %44 = vector.broadcast %cst_25 : f32 to vector<8x1xf32>
    %45 = arith.cmpf oeq, %43, %44 : vector<8x1xf32>
    %cst_26 = arith.constant 1.000000e+00 : f32
    %46 = vector.broadcast %cst_26 : f32 to vector<8x1xf32>
    %47 = arith.select %45, %46, %43 : vector<8x1xi1>, vector<8x1xf32>
    %cst_27 = arith.constant 0.000000e+00 : f32
    %48 = vector.broadcast %cst_27 : f32 to vector<8x1xf32>
    %49 = arith.cmpf oeq, %43, %48 : vector<8x1xf32>
    %50 = tpu.reciprocal %47 : vector<8x1xf32> -> vector<8x1xf32>
    %51 = arith.mulf %42, %50 : vector<8x1xf32>
    %cst_28 = arith.constant 0.000000e+00 : f32
    %52 = vector.broadcast %cst_28 : f32 to vector<8x1xf32>
    %53 = arith.select %49, %52, %51 : vector<8x1xi1>, vector<8x1xf32>
    %54 = vector.broadcast %53 : vector<8x1xf32> to vector<8x30xf32>
    %55 = arith.mulf %54, %37 : vector<8x30xf32>
    %56 = arith.addf %32, %55 : vector<8x30xf32>
    %cst_29 = arith.constant dense<0xFF800000> : vector<8xf32>
    %57 = vector.multi_reduction <maximumf>, %56, %cst_29 [1] : vector<8x30xf32> to vector<8xf32>
    %58 = vector.shape_cast %57 : vector<8xf32> to vector<8x1xf32>
    %cst_30 = arith.constant 8.000000e-02 : f32
    %59 = vector.broadcast %cst_30 : f32 to vector<8x1xf32>
    %60 = arith.cmpf ogt, %58, %59 : vector<8x1xf32>
    %cst_31 = arith.constant 0.000000e+00 : f32
    %cst_32 = arith.constant 8.000000e-02 : f32
    %61 = vector.broadcast %cst_31 : f32 to vector<8x30xf32>
    %62 = arith.maximumf %61, %56 : vector<8x30xf32>
    %63 = vector.broadcast %cst_32 : f32 to vector<8x30xf32>
    %64 = arith.minimumf %63, %62 : vector<8x30xf32>
    %65 = vector.shape_cast %60 : vector<8x1xi1> to vector<8x1xi1>
    %66 = vector.broadcast %65 : vector<8x1xi1> to vector<8x30xi1>
    %67 = arith.select %66, %64, %56 : vector<8x30xi1>, vector<8x30xf32>
    %c1_i32 = arith.constant 1 : i32
    %cst_33 = arith.constant 8.000000e-02 : f32
    %68 = vector.broadcast %cst_33 : f32 to vector<8x30xf32>
    %69 = arith.cmpf one, %67, %68 : vector<8x30xf32>
    %70 = arith.extui %69 : vector<8x30xi1> to vector<8x30xi32>
    %71 = arith.sitofp %70 : vector<8x30xi32> to vector<8x30xf32>
    %72 = arith.mulf %67, %71 : vector<8x30xf32>
    %73 = arith.subf %56, %67 : vector<8x30xf32>
    %74 = tpu.concatenate %73, %72 in 0 : vector<8x30xf32>, vector<8x30xf32> -> vector<16x30xf32>
    %cst_34 = arith.constant dense<0.000000e+00> : vector<16xf32>
    %75 = vector.multi_reduction <add>, %74, %cst_34 [1] : vector<16x30xf32> to vector<16xf32>
    %76 = vector.shape_cast %75 : vector<16xf32> to vector<16x1xf32>
    %77 = vector.extract_strided_slice %76 {offsets = [0, 0], sizes = [8, 1], strides = [1, 1]} : vector<16x1xf32> to vector<8x1xf32>
    %78 = vector.extract_strided_slice %76 {offsets = [8, 0], sizes = [8, 1], strides = [1, 1]} : vector<16x1xf32> to vector<8x1xf32>
    %cst_35 = arith.constant 0.000000e+00 : f32
    %79 = vector.broadcast %cst_35 : f32 to vector<8x1xf32>
    %80 = arith.cmpf oeq, %78, %79 : vector<8x1xf32>
    %cst_36 = arith.constant 1.000000e+00 : f32
    %81 = vector.broadcast %cst_36 : f32 to vector<8x1xf32>
    %82 = arith.select %80, %81, %78 : vector<8x1xi1>, vector<8x1xf32>
    %cst_37 = arith.constant 0.000000e+00 : f32
    %83 = vector.broadcast %cst_37 : f32 to vector<8x1xf32>
    %84 = arith.cmpf oeq, %78, %83 : vector<8x1xf32>
    %85 = tpu.reciprocal %82 : vector<8x1xf32> -> vector<8x1xf32>
    %86 = arith.mulf %77, %85 : vector<8x1xf32>
    %cst_38 = arith.constant 0.000000e+00 : f32
    %87 = vector.broadcast %cst_38 : f32 to vector<8x1xf32>
    %88 = arith.select %84, %87, %86 : vector<8x1xi1>, vector<8x1xf32>
    %89 = vector.broadcast %88 : vector<8x1xf32> to vector<8x30xf32>
    %90 = arith.mulf %89, %72 : vector<8x30xf32>
    %91 = arith.addf %67, %90 : vector<8x30xf32>
    %cst_39 = arith.constant dense<0xFF800000> : vector<8xf32>
    %92 = vector.multi_reduction <maximumf>, %91, %cst_39 [1] : vector<8x30xf32> to vector<8xf32>
    %93 = vector.shape_cast %92 : vector<8xf32> to vector<8x1xf32>
    %cst_40 = arith.constant 8.000000e-02 : f32
    %94 = vector.broadcast %cst_40 : f32 to vector<8x1xf32>
    %95 = arith.cmpf ogt, %93, %94 : vector<8x1xf32>
    %cst_41 = arith.constant 0.000000e+00 : f32
    %cst_42 = arith.constant 8.000000e-02 : f32
    %96 = vector.broadcast %cst_41 : f32 to vector<8x30xf32>
    %97 = arith.maximumf %96, %91 : vector<8x30xf32>
    %98 = vector.broadcast %cst_42 : f32 to vector<8x30xf32>
    %99 = arith.minimumf %98, %97 : vector<8x30xf32>
    %100 = vector.shape_cast %95 : vector<8x1xi1> to vector<8x1xi1>
    %101 = vector.broadcast %100 : vector<8x1xi1> to vector<8x30xi1>
    %102 = arith.select %101, %99, %91 : vector<8x30xi1>, vector<8x30xf32>
    %c2_i32 = arith.constant 2 : i32
    %cst_43 = arith.constant 8.000000e-02 : f32
    %103 = vector.broadcast %cst_43 : f32 to vector<8x30xf32>
    %104 = arith.cmpf one, %102, %103 : vector<8x30xf32>
    %105 = arith.extui %104 : vector<8x30xi1> to vector<8x30xi32>
    %106 = arith.sitofp %105 : vector<8x30xi32> to vector<8x30xf32>
    %107 = arith.mulf %102, %106 : vector<8x30xf32>
    %108 = arith.subf %91, %102 : vector<8x30xf32>
    %109 = tpu.concatenate %108, %107 in 0 : vector<8x30xf32>, vector<8x30xf32> -> vector<16x30xf32>
    %cst_44 = arith.constant dense<0.000000e+00> : vector<16xf32>
    %110 = vector.multi_reduction <add>, %109, %cst_44 [1] : vector<16x30xf32> to vector<16xf32>
    %111 = vector.shape_cast %110 : vector<16xf32> to vector<16x1xf32>
    %112 = vector.extract_strided_slice %111 {offsets = [0, 0], sizes = [8, 1], strides = [1, 1]} : vector<16x1xf32> to vector<8x1xf32>
    %113 = vector.extract_strided_slice %111 {offsets = [8, 0], sizes = [8, 1], strides = [1, 1]} : vector<16x1xf32> to vector<8x1xf32>
    %cst_45 = arith.constant 0.000000e+00 : f32
    %114 = vector.broadcast %cst_45 : f32 to vector<8x1xf32>
    %115 = arith.cmpf oeq, %113, %114 : vector<8x1xf32>
    %cst_46 = arith.constant 1.000000e+00 : f32
    %116 = vector.broadcast %cst_46 : f32 to vector<8x1xf32>
    %117 = arith.select %115, %116, %113 : vector<8x1xi1>, vector<8x1xf32>
    %cst_47 = arith.constant 0.000000e+00 : f32
    %118 = vector.broadcast %cst_47 : f32 to vector<8x1xf32>
    %119 = arith.cmpf oeq, %113, %118 : vector<8x1xf32>
    %120 = tpu.reciprocal %117 : vector<8x1xf32> -> vector<8x1xf32>
    %121 = arith.mulf %112, %120 : vector<8x1xf32>
    %cst_48 = arith.constant 0.000000e+00 : f32
    %122 = vector.broadcast %cst_48 : f32 to vector<8x1xf32>
    %123 = arith.select %119, %122, %121 : vector<8x1xi1>, vector<8x1xf32>
    %124 = vector.broadcast %123 : vector<8x1xf32> to vector<8x30xf32>
    %125 = arith.mulf %124, %107 : vector<8x30xf32>
    %126 = arith.addf %102, %125 : vector<8x30xf32>
    %cst_49 = arith.constant dense<0xFF800000> : vector<8xf32>
    %127 = vector.multi_reduction <maximumf>, %126, %cst_49 [1] : vector<8x30xf32> to vector<8xf32>
    %128 = vector.shape_cast %127 : vector<8xf32> to vector<8x1xf32>
    %cst_50 = arith.constant 8.000000e-02 : f32
    %129 = vector.broadcast %cst_50 : f32 to vector<8x1xf32>
    %130 = arith.cmpf ogt, %128, %129 : vector<8x1xf32>
    %cst_51 = arith.constant 0.000000e+00 : f32
    %cst_52 = arith.constant 8.000000e-02 : f32
    %131 = vector.broadcast %cst_51 : f32 to vector<8x30xf32>
    %132 = arith.maximumf %131, %126 : vector<8x30xf32>
    %133 = vector.broadcast %cst_52 : f32 to vector<8x30xf32>
    %134 = arith.minimumf %133, %132 : vector<8x30xf32>
    %135 = vector.shape_cast %130 : vector<8x1xi1> to vector<8x1xi1>
    %136 = vector.broadcast %135 : vector<8x1xi1> to vector<8x30xi1>
    %137 = arith.select %136, %134, %126 : vector<8x30xi1>, vector<8x30xf32>
    %c3_i32 = arith.constant 3 : i32
    %cst_53 = arith.constant 8.000000e-02 : f32
    %138 = vector.broadcast %cst_53 : f32 to vector<8x30xf32>
    %139 = arith.cmpf one, %137, %138 : vector<8x30xf32>
    %140 = arith.extui %139 : vector<8x30xi1> to vector<8x30xi32>
    %141 = arith.sitofp %140 : vector<8x30xi32> to vector<8x30xf32>
    %142 = arith.mulf %137, %141 : vector<8x30xf32>
    %143 = arith.subf %126, %137 : vector<8x30xf32>
    %144 = tpu.concatenate %143, %142 in 0 : vector<8x30xf32>, vector<8x30xf32> -> vector<16x30xf32>
    %cst_54 = arith.constant dense<0.000000e+00> : vector<16xf32>
    %145 = vector.multi_reduction <add>, %144, %cst_54 [1] : vector<16x30xf32> to vector<16xf32>
    %146 = vector.shape_cast %145 : vector<16xf32> to vector<16x1xf32>
    %147 = vector.extract_strided_slice %146 {offsets = [0, 0], sizes = [8, 1], strides = [1, 1]} : vector<16x1xf32> to vector<8x1xf32>
    %148 = vector.extract_strided_slice %146 {offsets = [8, 0], sizes = [8, 1], strides = [1, 1]} : vector<16x1xf32> to vector<8x1xf32>
    %cst_55 = arith.constant 0.000000e+00 : f32
    %149 = vector.broadcast %cst_55 : f32 to vector<8x1xf32>
    %150 = arith.cmpf oeq, %148, %149 : vector<8x1xf32>
    %cst_56 = arith.constant 1.000000e+00 : f32
    %151 = vector.broadcast %cst_56 : f32 to vector<8x1xf32>
    %152 = arith.select %150, %151, %148 : vector<8x1xi1>, vector<8x1xf32>
    %cst_57 = arith.constant 0.000000e+00 : f32
    %153 = vector.broadcast %cst_57 : f32 to vector<8x1xf32>
    %154 = arith.cmpf oeq, %148, %153 : vector<8x1xf32>
    %155 = tpu.reciprocal %152 : vector<8x1xf32> -> vector<8x1xf32>
    %156 = arith.mulf %147, %155 : vector<8x1xf32>
    %cst_58 = arith.constant 0.000000e+00 : f32
    %157 = vector.broadcast %cst_58 : f32 to vector<8x1xf32>
    %158 = arith.select %154, %157, %156 : vector<8x1xi1>, vector<8x1xf32>
    %159 = vector.broadcast %158 : vector<8x1xf32> to vector<8x30xf32>
    %160 = arith.mulf %159, %142 : vector<8x30xf32>
    %161 = arith.addf %137, %160 : vector<8x30xf32>
    %cst_59 = arith.constant dense<0xFF800000> : vector<8xf32>
    %162 = vector.multi_reduction <maximumf>, %161, %cst_59 [1] : vector<8x30xf32> to vector<8xf32>
    %163 = vector.shape_cast %162 : vector<8xf32> to vector<8x1xf32>
    %cst_60 = arith.constant 8.000000e-02 : f32
    %164 = vector.broadcast %cst_60 : f32 to vector<8x1xf32>
    %165 = arith.cmpf ogt, %163, %164 : vector<8x1xf32>
    %cst_61 = arith.constant 0.000000e+00 : f32
    %cst_62 = arith.constant 8.000000e-02 : f32
    %166 = vector.broadcast %cst_61 : f32 to vector<8x30xf32>
    %167 = arith.maximumf %166, %161 : vector<8x30xf32>
    %168 = vector.broadcast %cst_62 : f32 to vector<8x30xf32>
    %169 = arith.minimumf %168, %167 : vector<8x30xf32>
    %170 = vector.shape_cast %165 : vector<8x1xi1> to vector<8x1xi1>
    %171 = vector.broadcast %170 : vector<8x1xi1> to vector<8x30xi1>
    %172 = arith.select %171, %169, %161 : vector<8x30xi1>, vector<8x30xf32>
    %c4_i32 = arith.constant 4 : i32
    %cst_63 = arith.constant 8.000000e-02 : f32
    %173 = vector.broadcast %cst_63 : f32 to vector<8x30xf32>
    %174 = arith.cmpf one, %172, %173 : vector<8x30xf32>
    %175 = arith.extui %174 : vector<8x30xi1> to vector<8x30xi32>
    %176 = arith.sitofp %175 : vector<8x30xi32> to vector<8x30xf32>
    %177 = arith.mulf %172, %176 : vector<8x30xf32>
    %178 = arith.subf %161, %172 : vector<8x30xf32>
    %179 = tpu.concatenate %178, %177 in 0 : vector<8x30xf32>, vector<8x30xf32> -> vector<16x30xf32>
    %cst_64 = arith.constant dense<0.000000e+00> : vector<16xf32>
    %180 = vector.multi_reduction <add>, %179, %cst_64 [1] : vector<16x30xf32> to vector<16xf32>
    %181 = vector.shape_cast %180 : vector<16xf32> to vector<16x1xf32>
    %182 = vector.extract_strided_slice %181 {offsets = [0, 0], sizes = [8, 1], strides = [1, 1]} : vector<16x1xf32> to vector<8x1xf32>
    %183 = vector.extract_strided_slice %181 {offsets = [8, 0], sizes = [8, 1], strides = [1, 1]} : vector<16x1xf32> to vector<8x1xf32>
    %cst_65 = arith.constant 0.000000e+00 : f32
    %184 = vector.broadcast %cst_65 : f32 to vector<8x1xf32>
    %185 = arith.cmpf oeq, %183, %184 : vector<8x1xf32>
    %cst_66 = arith.constant 1.000000e+00 : f32
    %186 = vector.broadcast %cst_66 : f32 to vector<8x1xf32>
    %187 = arith.select %185, %186, %183 : vector<8x1xi1>, vector<8x1xf32>
    %cst_67 = arith.constant 0.000000e+00 : f32
    %188 = vector.broadcast %cst_67 : f32 to vector<8x1xf32>
    %189 = arith.cmpf oeq, %183, %188 : vector<8x1xf32>
    %190 = tpu.reciprocal %187 : vector<8x1xf32> -> vector<8x1xf32>
    %191 = arith.mulf %182, %190 : vector<8x1xf32>
    %cst_68 = arith.constant 0.000000e+00 : f32
    %192 = vector.broadcast %cst_68 : f32 to vector<8x1xf32>
    %193 = arith.select %189, %192, %191 : vector<8x1xi1>, vector<8x1xf32>
    %194 = vector.broadcast %193 : vector<8x1xf32> to vector<8x30xf32>
    %195 = arith.mulf %194, %177 : vector<8x30xf32>
    %196 = arith.addf %172, %195 : vector<8x30xf32>
    %cst_69 = arith.constant dense<0xFF800000> : vector<8xf32>
    %197 = vector.multi_reduction <maximumf>, %196, %cst_69 [1] : vector<8x30xf32> to vector<8xf32>
    %198 = vector.shape_cast %197 : vector<8xf32> to vector<8x1xf32>
    %cst_70 = arith.constant 8.000000e-02 : f32
    %199 = vector.broadcast %cst_70 : f32 to vector<8x1xf32>
    %200 = arith.cmpf ogt, %198, %199 : vector<8x1xf32>
    %cst_71 = arith.constant 0.000000e+00 : f32
    %cst_72 = arith.constant 8.000000e-02 : f32
    %201 = vector.broadcast %cst_71 : f32 to vector<8x30xf32>
    %202 = arith.maximumf %201, %196 : vector<8x30xf32>
    %203 = vector.broadcast %cst_72 : f32 to vector<8x30xf32>
    %204 = arith.minimumf %203, %202 : vector<8x30xf32>
    %205 = vector.shape_cast %200 : vector<8x1xi1> to vector<8x1xi1>
    %206 = vector.broadcast %205 : vector<8x1xi1> to vector<8x30xi1>
    %207 = arith.select %206, %204, %196 : vector<8x30xi1>, vector<8x30xf32>
    %c5_i32 = arith.constant 5 : i32
    %cst_73 = arith.constant 8.000000e-02 : f32
    %208 = vector.broadcast %cst_73 : f32 to vector<8x30xf32>
    %209 = arith.cmpf one, %207, %208 : vector<8x30xf32>
    %210 = arith.extui %209 : vector<8x30xi1> to vector<8x30xi32>
    %211 = arith.sitofp %210 : vector<8x30xi32> to vector<8x30xf32>
    %212 = arith.mulf %207, %211 : vector<8x30xf32>
    %213 = arith.subf %196, %207 : vector<8x30xf32>
    %214 = tpu.concatenate %213, %212 in 0 : vector<8x30xf32>, vector<8x30xf32> -> vector<16x30xf32>
    %cst_74 = arith.constant dense<0.000000e+00> : vector<16xf32>
    %215 = vector.multi_reduction <add>, %214, %cst_74 [1] : vector<16x30xf32> to vector<16xf32>
    %216 = vector.shape_cast %215 : vector<16xf32> to vector<16x1xf32>
    %217 = vector.extract_strided_slice %216 {offsets = [0, 0], sizes = [8, 1], strides = [1, 1]} : vector<16x1xf32> to vector<8x1xf32>
    %218 = vector.extract_strided_slice %216 {offsets = [8, 0], sizes = [8, 1], strides = [1, 1]} : vector<16x1xf32> to vector<8x1xf32>
    %cst_75 = arith.constant 0.000000e+00 : f32
    %219 = vector.broadcast %cst_75 : f32 to vector<8x1xf32>
    %220 = arith.cmpf oeq, %218, %219 : vector<8x1xf32>
    %cst_76 = arith.constant 1.000000e+00 : f32
    %221 = vector.broadcast %cst_76 : f32 to vector<8x1xf32>
    %222 = arith.select %220, %221, %218 : vector<8x1xi1>, vector<8x1xf32>
    %cst_77 = arith.constant 0.000000e+00 : f32
    %223 = vector.broadcast %cst_77 : f32 to vector<8x1xf32>
    %224 = arith.cmpf oeq, %218, %223 : vector<8x1xf32>
    %225 = tpu.reciprocal %222 : vector<8x1xf32> -> vector<8x1xf32>
    %226 = arith.mulf %217, %225 : vector<8x1xf32>
    %cst_78 = arith.constant 0.000000e+00 : f32
    %227 = vector.broadcast %cst_78 : f32 to vector<8x1xf32>
    %228 = arith.select %224, %227, %226 : vector<8x1xi1>, vector<8x1xf32>
    %229 = vector.broadcast %228 : vector<8x1xf32> to vector<8x30xf32>
    %230 = arith.mulf %229, %212 : vector<8x30xf32>
    %231 = arith.addf %207, %230 : vector<8x30xf32>
    %cst_79 = arith.constant dense<0xFF800000> : vector<8xf32>
    %232 = vector.multi_reduction <maximumf>, %231, %cst_79 [1] : vector<8x30xf32> to vector<8xf32>
    %233 = vector.shape_cast %232 : vector<8xf32> to vector<8x1xf32>
    %cst_80 = arith.constant 8.000000e-02 : f32
    %234 = vector.broadcast %cst_80 : f32 to vector<8x1xf32>
    %235 = arith.cmpf ogt, %233, %234 : vector<8x1xf32>
    %cst_81 = arith.constant 0.000000e+00 : f32
    %cst_82 = arith.constant 8.000000e-02 : f32
    %236 = vector.broadcast %cst_81 : f32 to vector<8x30xf32>
    %237 = arith.maximumf %236, %231 : vector<8x30xf32>
    %238 = vector.broadcast %cst_82 : f32 to vector<8x30xf32>
    %239 = arith.minimumf %238, %237 : vector<8x30xf32>
    %240 = vector.shape_cast %235 : vector<8x1xi1> to vector<8x1xi1>
    %241 = vector.broadcast %240 : vector<8x1xi1> to vector<8x30xi1>
    %242 = arith.select %241, %239, %231 : vector<8x30xi1>, vector<8x30xf32>
    %c6_i32 = arith.constant 6 : i32
    %cst_83 = arith.constant 8.000000e-02 : f32
    %243 = vector.broadcast %cst_83 : f32 to vector<8x30xf32>
    %244 = arith.cmpf one, %242, %243 : vector<8x30xf32>
    %245 = arith.extui %244 : vector<8x30xi1> to vector<8x30xi32>
    %246 = arith.sitofp %245 : vector<8x30xi32> to vector<8x30xf32>
    %247 = arith.mulf %242, %246 : vector<8x30xf32>
    %248 = arith.subf %231, %242 : vector<8x30xf32>
    %249 = tpu.concatenate %248, %247 in 0 : vector<8x30xf32>, vector<8x30xf32> -> vector<16x30xf32>
    %cst_84 = arith.constant dense<0.000000e+00> : vector<16xf32>
    %250 = vector.multi_reduction <add>, %249, %cst_84 [1] : vector<16x30xf32> to vector<16xf32>
    %251 = vector.shape_cast %250 : vector<16xf32> to vector<16x1xf32>
    %252 = vector.extract_strided_slice %251 {offsets = [0, 0], sizes = [8, 1], strides = [1, 1]} : vector<16x1xf32> to vector<8x1xf32>
    %253 = vector.extract_strided_slice %251 {offsets = [8, 0], sizes = [8, 1], strides = [1, 1]} : vector<16x1xf32> to vector<8x1xf32>
    %cst_85 = arith.constant 0.000000e+00 : f32
    %254 = vector.broadcast %cst_85 : f32 to vector<8x1xf32>
    %255 = arith.cmpf oeq, %253, %254 : vector<8x1xf32>
    %cst_86 = arith.constant 1.000000e+00 : f32
    %256 = vector.broadcast %cst_86 : f32 to vector<8x1xf32>
    %257 = arith.select %255, %256, %253 : vector<8x1xi1>, vector<8x1xf32>
    %cst_87 = arith.constant 0.000000e+00 : f32
    %258 = vector.broadcast %cst_87 : f32 to vector<8x1xf32>
    %259 = arith.cmpf oeq, %253, %258 : vector<8x1xf32>
    %260 = tpu.reciprocal %257 : vector<8x1xf32> -> vector<8x1xf32>
    %261 = arith.mulf %252, %260 : vector<8x1xf32>
    %cst_88 = arith.constant 0.000000e+00 : f32
    %262 = vector.broadcast %cst_88 : f32 to vector<8x1xf32>
    %263 = arith.select %259, %262, %261 : vector<8x1xi1>, vector<8x1xf32>
    %264 = vector.broadcast %263 : vector<8x1xf32> to vector<8x30xf32>
    %265 = arith.mulf %264, %247 : vector<8x30xf32>
    %266 = arith.addf %242, %265 : vector<8x30xf32>
    %cst_89 = arith.constant dense<0xFF800000> : vector<8xf32>
    %267 = vector.multi_reduction <maximumf>, %266, %cst_89 [1] : vector<8x30xf32> to vector<8xf32>
    %268 = vector.shape_cast %267 : vector<8xf32> to vector<8x1xf32>
    %cst_90 = arith.constant 8.000000e-02 : f32
    %269 = vector.broadcast %cst_90 : f32 to vector<8x1xf32>
    %270 = arith.cmpf ogt, %268, %269 : vector<8x1xf32>
    %cst_91 = arith.constant 0.000000e+00 : f32
    %cst_92 = arith.constant 8.000000e-02 : f32
    %271 = vector.broadcast %cst_91 : f32 to vector<8x30xf32>
    %272 = arith.maximumf %271, %266 : vector<8x30xf32>
    %273 = vector.broadcast %cst_92 : f32 to vector<8x30xf32>
    %274 = arith.minimumf %273, %272 : vector<8x30xf32>
    %275 = vector.shape_cast %270 : vector<8x1xi1> to vector<8x1xi1>
    %276 = vector.broadcast %275 : vector<8x1xi1> to vector<8x30xi1>
    %277 = arith.select %276, %274, %266 : vector<8x30xi1>, vector<8x30xf32>
    %c7_i32 = arith.constant 7 : i32
    %cst_93 = arith.constant 8.000000e-02 : f32
    %278 = vector.broadcast %cst_93 : f32 to vector<8x30xf32>
    %279 = arith.cmpf one, %277, %278 : vector<8x30xf32>
    %280 = arith.extui %279 : vector<8x30xi1> to vector<8x30xi32>
    %281 = arith.sitofp %280 : vector<8x30xi32> to vector<8x30xf32>
    %282 = arith.mulf %277, %281 : vector<8x30xf32>
    %283 = arith.subf %266, %277 : vector<8x30xf32>
    %284 = tpu.concatenate %283, %282 in 0 : vector<8x30xf32>, vector<8x30xf32> -> vector<16x30xf32>
    %cst_94 = arith.constant dense<0.000000e+00> : vector<16xf32>
    %285 = vector.multi_reduction <add>, %284, %cst_94 [1] : vector<16x30xf32> to vector<16xf32>
    %286 = vector.shape_cast %285 : vector<16xf32> to vector<16x1xf32>
    %287 = vector.extract_strided_slice %286 {offsets = [0, 0], sizes = [8, 1], strides = [1, 1]} : vector<16x1xf32> to vector<8x1xf32>
    %288 = vector.extract_strided_slice %286 {offsets = [8, 0], sizes = [8, 1], strides = [1, 1]} : vector<16x1xf32> to vector<8x1xf32>
    %cst_95 = arith.constant 0.000000e+00 : f32
    %289 = vector.broadcast %cst_95 : f32 to vector<8x1xf32>
    %290 = arith.cmpf oeq, %288, %289 : vector<8x1xf32>
    %cst_96 = arith.constant 1.000000e+00 : f32
    %291 = vector.broadcast %cst_96 : f32 to vector<8x1xf32>
    %292 = arith.select %290, %291, %288 : vector<8x1xi1>, vector<8x1xf32>
    %cst_97 = arith.constant 0.000000e+00 : f32
    %293 = vector.broadcast %cst_97 : f32 to vector<8x1xf32>
    %294 = arith.cmpf oeq, %288, %293 : vector<8x1xf32>
    %295 = tpu.reciprocal %292 : vector<8x1xf32> -> vector<8x1xf32>
    %296 = arith.mulf %287, %295 : vector<8x1xf32>
    %cst_98 = arith.constant 0.000000e+00 : f32
    %297 = vector.broadcast %cst_98 : f32 to vector<8x1xf32>
    %298 = arith.select %294, %297, %296 : vector<8x1xi1>, vector<8x1xf32>
    %299 = vector.broadcast %298 : vector<8x1xf32> to vector<8x30xf32>
    %300 = arith.mulf %299, %282 : vector<8x30xf32>
    %301 = arith.addf %277, %300 : vector<8x30xf32>
    %cst_99 = arith.constant dense<0xFF800000> : vector<8xf32>
    %302 = vector.multi_reduction <maximumf>, %301, %cst_99 [1] : vector<8x30xf32> to vector<8xf32>
    %303 = vector.shape_cast %302 : vector<8xf32> to vector<8x1xf32>
    %cst_100 = arith.constant 8.000000e-02 : f32
    %304 = vector.broadcast %cst_100 : f32 to vector<8x1xf32>
    %305 = arith.cmpf ogt, %303, %304 : vector<8x1xf32>
    %cst_101 = arith.constant 0.000000e+00 : f32
    %cst_102 = arith.constant 8.000000e-02 : f32
    %306 = vector.broadcast %cst_101 : f32 to vector<8x30xf32>
    %307 = arith.maximumf %306, %301 : vector<8x30xf32>
    %308 = vector.broadcast %cst_102 : f32 to vector<8x30xf32>
    %309 = arith.minimumf %308, %307 : vector<8x30xf32>
    %310 = vector.shape_cast %305 : vector<8x1xi1> to vector<8x1xi1>
    %311 = vector.broadcast %310 : vector<8x1xi1> to vector<8x30xi1>
    %312 = arith.select %311, %309, %301 : vector<8x30xi1>, vector<8x30xf32>
    %c8_i32 = arith.constant 8 : i32
    %cst_103 = arith.constant 8.000000e-02 : f32
    %313 = vector.broadcast %cst_103 : f32 to vector<8x30xf32>
    %314 = arith.cmpf one, %312, %313 : vector<8x30xf32>
    %315 = arith.extui %314 : vector<8x30xi1> to vector<8x30xi32>
    %316 = arith.sitofp %315 : vector<8x30xi32> to vector<8x30xf32>
    %317 = arith.mulf %312, %316 : vector<8x30xf32>
    %318 = arith.subf %301, %312 : vector<8x30xf32>
    %319 = tpu.concatenate %318, %317 in 0 : vector<8x30xf32>, vector<8x30xf32> -> vector<16x30xf32>
    %cst_104 = arith.constant dense<0.000000e+00> : vector<16xf32>
    %320 = vector.multi_reduction <add>, %319, %cst_104 [1] : vector<16x30xf32> to vector<16xf32>
    %321 = vector.shape_cast %320 : vector<16xf32> to vector<16x1xf32>
    %322 = vector.extract_strided_slice %321 {offsets = [0, 0], sizes = [8, 1], strides = [1, 1]} : vector<16x1xf32> to vector<8x1xf32>
    %323 = vector.extract_strided_slice %321 {offsets = [8, 0], sizes = [8, 1], strides = [1, 1]} : vector<16x1xf32> to vector<8x1xf32>
    %cst_105 = arith.constant 0.000000e+00 : f32
    %324 = vector.broadcast %cst_105 : f32 to vector<8x1xf32>
    %325 = arith.cmpf oeq, %323, %324 : vector<8x1xf32>
    %cst_106 = arith.constant 1.000000e+00 : f32
    %326 = vector.broadcast %cst_106 : f32 to vector<8x1xf32>
    %327 = arith.select %325, %326, %323 : vector<8x1xi1>, vector<8x1xf32>
    %cst_107 = arith.constant 0.000000e+00 : f32
    %328 = vector.broadcast %cst_107 : f32 to vector<8x1xf32>
    %329 = arith.cmpf oeq, %323, %328 : vector<8x1xf32>
    %330 = tpu.reciprocal %327 : vector<8x1xf32> -> vector<8x1xf32>
    %331 = arith.mulf %322, %330 : vector<8x1xf32>
    %cst_108 = arith.constant 0.000000e+00 : f32
    %332 = vector.broadcast %cst_108 : f32 to vector<8x1xf32>
    %333 = arith.select %329, %332, %331 : vector<8x1xi1>, vector<8x1xf32>
    %334 = vector.broadcast %333 : vector<8x1xf32> to vector<8x30xf32>
    %335 = arith.mulf %334, %317 : vector<8x30xf32>
    %336 = arith.addf %312, %335 : vector<8x30xf32>
    %cst_109 = arith.constant dense<0xFF800000> : vector<8xf32>
    %337 = vector.multi_reduction <maximumf>, %336, %cst_109 [1] : vector<8x30xf32> to vector<8xf32>
    %338 = vector.shape_cast %337 : vector<8xf32> to vector<8x1xf32>
    %cst_110 = arith.constant 8.000000e-02 : f32
    %339 = vector.broadcast %cst_110 : f32 to vector<8x1xf32>
    %340 = arith.cmpf ogt, %338, %339 : vector<8x1xf32>
    %cst_111 = arith.constant 0.000000e+00 : f32
    %cst_112 = arith.constant 8.000000e-02 : f32
    %341 = vector.broadcast %cst_111 : f32 to vector<8x30xf32>
    %342 = arith.maximumf %341, %336 : vector<8x30xf32>
    %343 = vector.broadcast %cst_112 : f32 to vector<8x30xf32>
    %344 = arith.minimumf %343, %342 : vector<8x30xf32>
    %345 = vector.shape_cast %340 : vector<8x1xi1> to vector<8x1xi1>
    %346 = vector.broadcast %345 : vector<8x1xi1> to vector<8x30xi1>
    %347 = arith.select %346, %344, %336 : vector<8x30xi1>, vector<8x30xf32>
    %c9_i32 = arith.constant 9 : i32
    %cst_113 = arith.constant 8.000000e-02 : f32
    %348 = vector.broadcast %cst_113 : f32 to vector<8x30xf32>
    %349 = arith.cmpf one, %347, %348 : vector<8x30xf32>
    %350 = arith.extui %349 : vector<8x30xi1> to vector<8x30xi32>
    %351 = arith.sitofp %350 : vector<8x30xi32> to vector<8x30xf32>
    %352 = arith.mulf %347, %351 : vector<8x30xf32>
    %353 = arith.subf %336, %347 : vector<8x30xf32>
    %354 = tpu.concatenate %353, %352 in 0 : vector<8x30xf32>, vector<8x30xf32> -> vector<16x30xf32>
    %cst_114 = arith.constant dense<0.000000e+00> : vector<16xf32>
    %355 = vector.multi_reduction <add>, %354, %cst_114 [1] : vector<16x30xf32> to vector<16xf32>
    %356 = vector.shape_cast %355 : vector<16xf32> to vector<16x1xf32>
    %357 = vector.extract_strided_slice %356 {offsets = [0, 0], sizes = [8, 1], strides = [1, 1]} : vector<16x1xf32> to vector<8x1xf32>
    %358 = vector.extract_strided_slice %356 {offsets = [8, 0], sizes = [8, 1], strides = [1, 1]} : vector<16x1xf32> to vector<8x1xf32>
    %cst_115 = arith.constant 0.000000e+00 : f32
    %359 = vector.broadcast %cst_115 : f32 to vector<8x1xf32>
    %360 = arith.cmpf oeq, %358, %359 : vector<8x1xf32>
    %cst_116 = arith.constant 1.000000e+00 : f32
    %361 = vector.broadcast %cst_116 : f32 to vector<8x1xf32>
    %362 = arith.select %360, %361, %358 : vector<8x1xi1>, vector<8x1xf32>
    %cst_117 = arith.constant 0.000000e+00 : f32
    %363 = vector.broadcast %cst_117 : f32 to vector<8x1xf32>
    %364 = arith.cmpf oeq, %358, %363 : vector<8x1xf32>
    %365 = tpu.reciprocal %362 : vector<8x1xf32> -> vector<8x1xf32>
    %366 = arith.mulf %357, %365 : vector<8x1xf32>
    %cst_118 = arith.constant 0.000000e+00 : f32
    %367 = vector.broadcast %cst_118 : f32 to vector<8x1xf32>
    %368 = arith.select %364, %367, %366 : vector<8x1xi1>, vector<8x1xf32>
    %369 = vector.broadcast %368 : vector<8x1xf32> to vector<8x30xf32>
    %370 = arith.mulf %369, %352 : vector<8x30xf32>
    %371 = arith.addf %347, %370 : vector<8x30xf32>
    %cst_119 = arith.constant dense<0xFF800000> : vector<8xf32>
    %372 = vector.multi_reduction <maximumf>, %371, %cst_119 [1] : vector<8x30xf32> to vector<8xf32>
    %373 = vector.shape_cast %372 : vector<8xf32> to vector<8x1xf32>
    %cst_120 = arith.constant 8.000000e-02 : f32
    %374 = vector.broadcast %cst_120 : f32 to vector<8x1xf32>
    %375 = arith.cmpf ogt, %373, %374 : vector<8x1xf32>
    %cst_121 = arith.constant 0.000000e+00 : f32
    %cst_122 = arith.constant 8.000000e-02 : f32
    %376 = vector.broadcast %cst_121 : f32 to vector<8x30xf32>
    %377 = arith.maximumf %376, %371 : vector<8x30xf32>
    %378 = vector.broadcast %cst_122 : f32 to vector<8x30xf32>
    %379 = arith.minimumf %378, %377 : vector<8x30xf32>
    %380 = vector.shape_cast %375 : vector<8x1xi1> to vector<8x1xi1>
    %381 = vector.broadcast %380 : vector<8x1xi1> to vector<8x30xi1>
    %382 = arith.select %381, %379, %371 : vector<8x30xi1>, vector<8x30xf32>
    %c10_i32 = arith.constant 10 : i32
    %cst_123 = arith.constant 8.000000e-02 : f32
    %383 = vector.broadcast %cst_123 : f32 to vector<8x30xf32>
    %384 = arith.cmpf one, %382, %383 : vector<8x30xf32>
    %385 = arith.extui %384 : vector<8x30xi1> to vector<8x30xi32>
    %386 = arith.sitofp %385 : vector<8x30xi32> to vector<8x30xf32>
    %387 = arith.mulf %382, %386 : vector<8x30xf32>
    %388 = arith.subf %371, %382 : vector<8x30xf32>
    %389 = tpu.concatenate %388, %387 in 0 : vector<8x30xf32>, vector<8x30xf32> -> vector<16x30xf32>
    %cst_124 = arith.constant dense<0.000000e+00> : vector<16xf32>
    %390 = vector.multi_reduction <add>, %389, %cst_124 [1] : vector<16x30xf32> to vector<16xf32>
    %391 = vector.shape_cast %390 : vector<16xf32> to vector<16x1xf32>
    %392 = vector.extract_strided_slice %391 {offsets = [0, 0], sizes = [8, 1], strides = [1, 1]} : vector<16x1xf32> to vector<8x1xf32>
    %393 = vector.extract_strided_slice %391 {offsets = [8, 0], sizes = [8, 1], strides = [1, 1]} : vector<16x1xf32> to vector<8x1xf32>
    %cst_125 = arith.constant 0.000000e+00 : f32
    %394 = vector.broadcast %cst_125 : f32 to vector<8x1xf32>
    %395 = arith.cmpf oeq, %393, %394 : vector<8x1xf32>
    %cst_126 = arith.constant 1.000000e+00 : f32
    %396 = vector.broadcast %cst_126 : f32 to vector<8x1xf32>
    %397 = arith.select %395, %396, %393 : vector<8x1xi1>, vector<8x1xf32>
    %cst_127 = arith.constant 0.000000e+00 : f32
    %398 = vector.broadcast %cst_127 : f32 to vector<8x1xf32>
    %399 = arith.cmpf oeq, %393, %398 : vector<8x1xf32>
    %400 = tpu.reciprocal %397 : vector<8x1xf32> -> vector<8x1xf32>
    %401 = arith.mulf %392, %400 : vector<8x1xf32>
    %cst_128 = arith.constant 0.000000e+00 : f32
    %402 = vector.broadcast %cst_128 : f32 to vector<8x1xf32>
    %403 = arith.select %399, %402, %401 : vector<8x1xi1>, vector<8x1xf32>
    %404 = vector.broadcast %403 : vector<8x1xf32> to vector<8x30xf32>
    %405 = arith.mulf %404, %387 : vector<8x30xf32>
    %406 = arith.addf %382, %405 : vector<8x30xf32>
    %cst_129 = arith.constant dense<0xFF800000> : vector<8xf32>
    %407 = vector.multi_reduction <maximumf>, %406, %cst_129 [1] : vector<8x30xf32> to vector<8xf32>
    %408 = vector.shape_cast %407 : vector<8xf32> to vector<8x1xf32>
    %cst_130 = arith.constant 8.000000e-02 : f32
    %409 = vector.broadcast %cst_130 : f32 to vector<8x1xf32>
    %410 = arith.cmpf ogt, %408, %409 : vector<8x1xf32>
    %cst_131 = arith.constant 0.000000e+00 : f32
    %cst_132 = arith.constant 8.000000e-02 : f32
    %411 = vector.broadcast %cst_131 : f32 to vector<8x30xf32>
    %412 = arith.maximumf %411, %406 : vector<8x30xf32>
    %413 = vector.broadcast %cst_132 : f32 to vector<8x30xf32>
    %414 = arith.minimumf %413, %412 : vector<8x30xf32>
    %415 = vector.shape_cast %410 : vector<8x1xi1> to vector<8x1xi1>
    %416 = vector.broadcast %415 : vector<8x1xi1> to vector<8x30xi1>
    %417 = arith.select %416, %414, %406 : vector<8x30xi1>, vector<8x30xf32>
    %c11_i32 = arith.constant 11 : i32
    %cst_133 = arith.constant 8.000000e-02 : f32
    %418 = vector.broadcast %cst_133 : f32 to vector<8x30xf32>
    %419 = arith.cmpf one, %417, %418 : vector<8x30xf32>
    %420 = arith.extui %419 : vector<8x30xi1> to vector<8x30xi32>
    %421 = arith.sitofp %420 : vector<8x30xi32> to vector<8x30xf32>
    %422 = arith.mulf %417, %421 : vector<8x30xf32>
    %423 = arith.subf %406, %417 : vector<8x30xf32>
    %424 = tpu.concatenate %423, %422 in 0 : vector<8x30xf32>, vector<8x30xf32> -> vector<16x30xf32>
    %cst_134 = arith.constant dense<0.000000e+00> : vector<16xf32>
    %425 = vector.multi_reduction <add>, %424, %cst_134 [1] : vector<16x30xf32> to vector<16xf32>
    %426 = vector.shape_cast %425 : vector<16xf32> to vector<16x1xf32>
    %427 = vector.extract_strided_slice %426 {offsets = [0, 0], sizes = [8, 1], strides = [1, 1]} : vector<16x1xf32> to vector<8x1xf32>
    %428 = vector.extract_strided_slice %426 {offsets = [8, 0], sizes = [8, 1], strides = [1, 1]} : vector<16x1xf32> to vector<8x1xf32>
    %cst_135 = arith.constant 0.000000e+00 : f32
    %429 = vector.broadcast %cst_135 : f32 to vector<8x1xf32>
    %430 = arith.cmpf oeq, %428, %429 : vector<8x1xf32>
    %cst_136 = arith.constant 1.000000e+00 : f32
    %431 = vector.broadcast %cst_136 : f32 to vector<8x1xf32>
    %432 = arith.select %430, %431, %428 : vector<8x1xi1>, vector<8x1xf32>
    %cst_137 = arith.constant 0.000000e+00 : f32
    %433 = vector.broadcast %cst_137 : f32 to vector<8x1xf32>
    %434 = arith.cmpf oeq, %428, %433 : vector<8x1xf32>
    %435 = tpu.reciprocal %432 : vector<8x1xf32> -> vector<8x1xf32>
    %436 = arith.mulf %427, %435 : vector<8x1xf32>
    %cst_138 = arith.constant 0.000000e+00 : f32
    %437 = vector.broadcast %cst_138 : f32 to vector<8x1xf32>
    %438 = arith.select %434, %437, %436 : vector<8x1xi1>, vector<8x1xf32>
    %439 = vector.broadcast %438 : vector<8x1xf32> to vector<8x30xf32>
    %440 = arith.mulf %439, %422 : vector<8x30xf32>
    %441 = arith.addf %417, %440 : vector<8x30xf32>
    %cst_139 = arith.constant dense<0xFF800000> : vector<8xf32>
    %442 = vector.multi_reduction <maximumf>, %441, %cst_139 [1] : vector<8x30xf32> to vector<8xf32>
    %443 = vector.shape_cast %442 : vector<8xf32> to vector<8x1xf32>
    %cst_140 = arith.constant 8.000000e-02 : f32
    %444 = vector.broadcast %cst_140 : f32 to vector<8x1xf32>
    %445 = arith.cmpf ogt, %443, %444 : vector<8x1xf32>
    %cst_141 = arith.constant 0.000000e+00 : f32
    %cst_142 = arith.constant 8.000000e-02 : f32
    %446 = vector.broadcast %cst_141 : f32 to vector<8x30xf32>
    %447 = arith.maximumf %446, %441 : vector<8x30xf32>
    %448 = vector.broadcast %cst_142 : f32 to vector<8x30xf32>
    %449 = arith.minimumf %448, %447 : vector<8x30xf32>
    %450 = vector.shape_cast %445 : vector<8x1xi1> to vector<8x1xi1>
    %451 = vector.broadcast %450 : vector<8x1xi1> to vector<8x30xi1>
    %452 = arith.select %451, %449, %441 : vector<8x30xi1>, vector<8x30xf32>
    %c12_i32 = arith.constant 12 : i32
    %cst_143 = arith.constant 8.000000e-02 : f32
    %453 = vector.broadcast %cst_143 : f32 to vector<8x30xf32>
    %454 = arith.cmpf one, %452, %453 : vector<8x30xf32>
    %455 = arith.extui %454 : vector<8x30xi1> to vector<8x30xi32>
    %456 = arith.sitofp %455 : vector<8x30xi32> to vector<8x30xf32>
    %457 = arith.mulf %452, %456 : vector<8x30xf32>
    %458 = arith.subf %441, %452 : vector<8x30xf32>
    %459 = tpu.concatenate %458, %457 in 0 : vector<8x30xf32>, vector<8x30xf32> -> vector<16x30xf32>
    %cst_144 = arith.constant dense<0.000000e+00> : vector<16xf32>
    %460 = vector.multi_reduction <add>, %459, %cst_144 [1] : vector<16x30xf32> to vector<16xf32>
    %461 = vector.shape_cast %460 : vector<16xf32> to vector<16x1xf32>
    %462 = vector.extract_strided_slice %461 {offsets = [0, 0], sizes = [8, 1], strides = [1, 1]} : vector<16x1xf32> to vector<8x1xf32>
    %463 = vector.extract_strided_slice %461 {offsets = [8, 0], sizes = [8, 1], strides = [1, 1]} : vector<16x1xf32> to vector<8x1xf32>
    %cst_145 = arith.constant 0.000000e+00 : f32
    %464 = vector.broadcast %cst_145 : f32 to vector<8x1xf32>
    %465 = arith.cmpf oeq, %463, %464 : vector<8x1xf32>
    %cst_146 = arith.constant 1.000000e+00 : f32
    %466 = vector.broadcast %cst_146 : f32 to vector<8x1xf32>
    %467 = arith.select %465, %466, %463 : vector<8x1xi1>, vector<8x1xf32>
    %cst_147 = arith.constant 0.000000e+00 : f32
    %468 = vector.broadcast %cst_147 : f32 to vector<8x1xf32>
    %469 = arith.cmpf oeq, %463, %468 : vector<8x1xf32>
    %470 = tpu.reciprocal %467 : vector<8x1xf32> -> vector<8x1xf32>
    %471 = arith.mulf %462, %470 : vector<8x1xf32>
    %cst_148 = arith.constant 0.000000e+00 : f32
    %472 = vector.broadcast %cst_148 : f32 to vector<8x1xf32>
    %473 = arith.select %469, %472, %471 : vector<8x1xi1>, vector<8x1xf32>
    %474 = vector.broadcast %473 : vector<8x1xf32> to vector<8x30xf32>
    %475 = arith.mulf %474, %457 : vector<8x30xf32>
    %476 = arith.addf %452, %475 : vector<8x30xf32>
    %cst_149 = arith.constant dense<0xFF800000> : vector<8xf32>
    %477 = vector.multi_reduction <maximumf>, %476, %cst_149 [1] : vector<8x30xf32> to vector<8xf32>
    %478 = vector.shape_cast %477 : vector<8xf32> to vector<8x1xf32>
    %cst_150 = arith.constant 8.000000e-02 : f32
    %479 = vector.broadcast %cst_150 : f32 to vector<8x1xf32>
    %480 = arith.cmpf ogt, %478, %479 : vector<8x1xf32>
    %cst_151 = arith.constant 0.000000e+00 : f32
    %cst_152 = arith.constant 8.000000e-02 : f32
    %481 = vector.broadcast %cst_151 : f32 to vector<8x30xf32>
    %482 = arith.maximumf %481, %476 : vector<8x30xf32>
    %483 = vector.broadcast %cst_152 : f32 to vector<8x30xf32>
    %484 = arith.minimumf %483, %482 : vector<8x30xf32>
    %485 = vector.shape_cast %480 : vector<8x1xi1> to vector<8x1xi1>
    %486 = vector.broadcast %485 : vector<8x1xi1> to vector<8x30xi1>
    %487 = arith.select %486, %484, %476 : vector<8x30xi1>, vector<8x30xf32>
    %c13_i32 = arith.constant 13 : i32
    %cst_153 = arith.constant 8.000000e-02 : f32
    %488 = vector.broadcast %cst_153 : f32 to vector<8x30xf32>
    %489 = arith.cmpf one, %487, %488 : vector<8x30xf32>
    %490 = arith.extui %489 : vector<8x30xi1> to vector<8x30xi32>
    %491 = arith.sitofp %490 : vector<8x30xi32> to vector<8x30xf32>
    %492 = arith.mulf %487, %491 : vector<8x30xf32>
    %493 = arith.subf %476, %487 : vector<8x30xf32>
    %494 = tpu.concatenate %493, %492 in 0 : vector<8x30xf32>, vector<8x30xf32> -> vector<16x30xf32>
    %cst_154 = arith.constant dense<0.000000e+00> : vector<16xf32>
    %495 = vector.multi_reduction <add>, %494, %cst_154 [1] : vector<16x30xf32> to vector<16xf32>
    %496 = vector.shape_cast %495 : vector<16xf32> to vector<16x1xf32>
    %497 = vector.extract_strided_slice %496 {offsets = [0, 0], sizes = [8, 1], strides = [1, 1]} : vector<16x1xf32> to vector<8x1xf32>
    %498 = vector.extract_strided_slice %496 {offsets = [8, 0], sizes = [8, 1], strides = [1, 1]} : vector<16x1xf32> to vector<8x1xf32>
    %cst_155 = arith.constant 0.000000e+00 : f32
    %499 = vector.broadcast %cst_155 : f32 to vector<8x1xf32>
    %500 = arith.cmpf oeq, %498, %499 : vector<8x1xf32>
    %cst_156 = arith.constant 1.000000e+00 : f32
    %501 = vector.broadcast %cst_156 : f32 to vector<8x1xf32>
    %502 = arith.select %500, %501, %498 : vector<8x1xi1>, vector<8x1xf32>
    %cst_157 = arith.constant 0.000000e+00 : f32
    %503 = vector.broadcast %cst_157 : f32 to vector<8x1xf32>
    %504 = arith.cmpf oeq, %498, %503 : vector<8x1xf32>
    %505 = tpu.reciprocal %502 : vector<8x1xf32> -> vector<8x1xf32>
    %506 = arith.mulf %497, %505 : vector<8x1xf32>
    %cst_158 = arith.constant 0.000000e+00 : f32
    %507 = vector.broadcast %cst_158 : f32 to vector<8x1xf32>
    %508 = arith.select %504, %507, %506 : vector<8x1xi1>, vector<8x1xf32>
    %509 = vector.broadcast %508 : vector<8x1xf32> to vector<8x30xf32>
    %510 = arith.mulf %509, %492 : vector<8x30xf32>
    %511 = arith.addf %487, %510 : vector<8x30xf32>
    %cst_159 = arith.constant dense<0xFF800000> : vector<8xf32>
    %512 = vector.multi_reduction <maximumf>, %511, %cst_159 [1] : vector<8x30xf32> to vector<8xf32>
    %513 = vector.shape_cast %512 : vector<8xf32> to vector<8x1xf32>
    %cst_160 = arith.constant 8.000000e-02 : f32
    %514 = vector.broadcast %cst_160 : f32 to vector<8x1xf32>
    %515 = arith.cmpf ogt, %513, %514 : vector<8x1xf32>
    %cst_161 = arith.constant 0.000000e+00 : f32
    %cst_162 = arith.constant 8.000000e-02 : f32
    %516 = vector.broadcast %cst_161 : f32 to vector<8x30xf32>
    %517 = arith.maximumf %516, %511 : vector<8x30xf32>
    %518 = vector.broadcast %cst_162 : f32 to vector<8x30xf32>
    %519 = arith.minimumf %518, %517 : vector<8x30xf32>
    %520 = vector.shape_cast %515 : vector<8x1xi1> to vector<8x1xi1>
    %521 = vector.broadcast %520 : vector<8x1xi1> to vector<8x30xi1>
    %522 = arith.select %521, %519, %511 : vector<8x30xi1>, vector<8x30xf32>
    %c14_i32 = arith.constant 14 : i32
    %cst_163 = arith.constant 8.000000e-02 : f32
    %523 = vector.broadcast %cst_163 : f32 to vector<8x30xf32>
    %524 = arith.cmpf one, %522, %523 : vector<8x30xf32>
    %525 = arith.extui %524 : vector<8x30xi1> to vector<8x30xi32>
    %526 = arith.sitofp %525 : vector<8x30xi32> to vector<8x30xf32>
    %527 = arith.mulf %522, %526 : vector<8x30xf32>
    %528 = arith.subf %511, %522 : vector<8x30xf32>
    %529 = tpu.concatenate %528, %527 in 0 : vector<8x30xf32>, vector<8x30xf32> -> vector<16x30xf32>
    %cst_164 = arith.constant dense<0.000000e+00> : vector<16xf32>
    %530 = vector.multi_reduction <add>, %529, %cst_164 [1] : vector<16x30xf32> to vector<16xf32>
    %531 = vector.shape_cast %530 : vector<16xf32> to vector<16x1xf32>
    %532 = vector.extract_strided_slice %531 {offsets = [0, 0], sizes = [8, 1], strides = [1, 1]} : vector<16x1xf32> to vector<8x1xf32>
    %533 = vector.extract_strided_slice %531 {offsets = [8, 0], sizes = [8, 1], strides = [1, 1]} : vector<16x1xf32> to vector<8x1xf32>
    %cst_165 = arith.constant 0.000000e+00 : f32
    %534 = vector.broadcast %cst_165 : f32 to vector<8x1xf32>
    %535 = arith.cmpf oeq, %533, %534 : vector<8x1xf32>
    %cst_166 = arith.constant 1.000000e+00 : f32
    %536 = vector.broadcast %cst_166 : f32 to vector<8x1xf32>
    %537 = arith.select %535, %536, %533 : vector<8x1xi1>, vector<8x1xf32>
    %cst_167 = arith.constant 0.000000e+00 : f32
    %538 = vector.broadcast %cst_167 : f32 to vector<8x1xf32>
    %539 = arith.cmpf oeq, %533, %538 : vector<8x1xf32>
    %540 = tpu.reciprocal %537 : vector<8x1xf32> -> vector<8x1xf32>
    %541 = arith.mulf %532, %540 : vector<8x1xf32>
    %cst_168 = arith.constant 0.000000e+00 : f32
    %542 = vector.broadcast %cst_168 : f32 to vector<8x1xf32>
    %543 = arith.select %539, %542, %541 : vector<8x1xi1>, vector<8x1xf32>
    %544 = vector.broadcast %543 : vector<8x1xf32> to vector<8x30xf32>
    %545 = arith.mulf %544, %527 : vector<8x30xf32>
    %546 = arith.addf %522, %545 : vector<8x30xf32>
    %cst_169 = arith.constant dense<0xFF800000> : vector<8xf32>
    %547 = vector.multi_reduction <maximumf>, %546, %cst_169 [1] : vector<8x30xf32> to vector<8xf32>
    %548 = vector.shape_cast %547 : vector<8xf32> to vector<8x1xf32>
    %cst_170 = arith.constant 8.000000e-02 : f32
    %549 = vector.broadcast %cst_170 : f32 to vector<8x1xf32>
    %550 = arith.cmpf ogt, %548, %549 : vector<8x1xf32>
    %cst_171 = arith.constant 0.000000e+00 : f32
    %cst_172 = arith.constant 8.000000e-02 : f32
    %551 = vector.broadcast %cst_171 : f32 to vector<8x30xf32>
    %552 = arith.maximumf %551, %546 : vector<8x30xf32>
    %553 = vector.broadcast %cst_172 : f32 to vector<8x30xf32>
    %554 = arith.minimumf %553, %552 : vector<8x30xf32>
    %555 = vector.shape_cast %550 : vector<8x1xi1> to vector<8x1xi1>
    %556 = vector.broadcast %555 : vector<8x1xi1> to vector<8x30xi1>
    %557 = arith.select %556, %554, %546 : vector<8x30xi1>, vector<8x30xf32>
    %c15_i32 = arith.constant 15 : i32
    %cst_173 = arith.constant 8.000000e-02 : f32
    %558 = vector.broadcast %cst_173 : f32 to vector<8x30xf32>
    %559 = arith.cmpf one, %557, %558 : vector<8x30xf32>
    %560 = arith.extui %559 : vector<8x30xi1> to vector<8x30xi32>
    %561 = arith.sitofp %560 : vector<8x30xi32> to vector<8x30xf32>
    %562 = arith.mulf %557, %561 : vector<8x30xf32>
    %563 = arith.subf %546, %557 : vector<8x30xf32>
    %564 = tpu.concatenate %563, %562 in 0 : vector<8x30xf32>, vector<8x30xf32> -> vector<16x30xf32>
    %cst_174 = arith.constant dense<0.000000e+00> : vector<16xf32>
    %565 = vector.multi_reduction <add>, %564, %cst_174 [1] : vector<16x30xf32> to vector<16xf32>
    %566 = vector.shape_cast %565 : vector<16xf32> to vector<16x1xf32>
    %567 = vector.extract_strided_slice %566 {offsets = [0, 0], sizes = [8, 1], strides = [1, 1]} : vector<16x1xf32> to vector<8x1xf32>
    %568 = vector.extract_strided_slice %566 {offsets = [8, 0], sizes = [8, 1], strides = [1, 1]} : vector<16x1xf32> to vector<8x1xf32>
    %cst_175 = arith.constant 0.000000e+00 : f32
    %569 = vector.broadcast %cst_175 : f32 to vector<8x1xf32>
    %570 = arith.cmpf oeq, %568, %569 : vector<8x1xf32>
    %cst_176 = arith.constant 1.000000e+00 : f32
    %571 = vector.broadcast %cst_176 : f32 to vector<8x1xf32>
    %572 = arith.select %570, %571, %568 : vector<8x1xi1>, vector<8x1xf32>
    %cst_177 = arith.constant 0.000000e+00 : f32
    %573 = vector.broadcast %cst_177 : f32 to vector<8x1xf32>
    %574 = arith.cmpf oeq, %568, %573 : vector<8x1xf32>
    %575 = tpu.reciprocal %572 : vector<8x1xf32> -> vector<8x1xf32>
    %576 = arith.mulf %567, %575 : vector<8x1xf32>
    %cst_178 = arith.constant 0.000000e+00 : f32
    %577 = vector.broadcast %cst_178 : f32 to vector<8x1xf32>
    %578 = arith.select %574, %577, %576 : vector<8x1xi1>, vector<8x1xf32>
    %579 = vector.broadcast %578 : vector<8x1xf32> to vector<8x30xf32>
    %580 = arith.mulf %579, %562 : vector<8x30xf32>
    %581 = arith.addf %557, %580 : vector<8x30xf32>
    %cst_179 = arith.constant dense<0xFF800000> : vector<8xf32>
    %582 = vector.multi_reduction <maximumf>, %581, %cst_179 [1] : vector<8x30xf32> to vector<8xf32>
    %583 = vector.shape_cast %582 : vector<8xf32> to vector<8x1xf32>
    %cst_180 = arith.constant 8.000000e-02 : f32
    %584 = vector.broadcast %cst_180 : f32 to vector<8x1xf32>
    %585 = arith.cmpf ogt, %583, %584 : vector<8x1xf32>
    %cst_181 = arith.constant 0.000000e+00 : f32
    %cst_182 = arith.constant 8.000000e-02 : f32
    %586 = vector.broadcast %cst_181 : f32 to vector<8x30xf32>
    %587 = arith.maximumf %586, %581 : vector<8x30xf32>
    %588 = vector.broadcast %cst_182 : f32 to vector<8x30xf32>
    %589 = arith.minimumf %588, %587 : vector<8x30xf32>
    %590 = vector.shape_cast %585 : vector<8x1xi1> to vector<8x1xi1>
    %591 = vector.broadcast %590 : vector<8x1xi1> to vector<8x30xi1>
    %592 = arith.select %591, %589, %581 : vector<8x30xi1>, vector<8x30xf32>
    %c0_183 = arith.constant 0 : index
    %c0_184 = arith.constant 0 : index
    %593 = vector.load %arg0[%c0_183, %c0_184] : memref<8x1xf32, #tpu.memory_space<vmem>>, vector<8x1xf32>
    %cst_185 = arith.constant 1.030000e+00 : f32
    %594 = vector.broadcast %cst_185 : f32 to vector<8x1xf32>
    %595 = arith.mulf %593, %594 : vector<8x1xf32>
    %cst_186 = arith.constant 1.000000e+00 : f32
    %596 = vector.broadcast %cst_186 : f32 to vector<8x30xf32>
    %597 = arith.addf %596, %9 : vector<8x30xf32>
    %598 = arith.mulf %592, %597 : vector<8x30xf32>
    %cst_187 = arith.constant dense<0.000000e+00> : vector<8xf32>
    %599 = vector.multi_reduction <add>, %598, %cst_187 [1] : vector<8x30xf32> to vector<8xf32>
    %600 = vector.shape_cast %599 : vector<8xf32> to vector<8x1xf32>
    %601 = arith.mulf %595, %600 : vector<8x1xf32>
    %c0_188 = arith.constant 0 : index
    %c0_189 = arith.constant 0 : index
    %602 = vector.load %arg9[%c0_188, %c0_189] : memref<8x1xf32, #tpu.memory_space<vmem>>, vector<8x1xf32>
    tpu.vector_store %arg9[%c0_188, %c0_189], %601 {strides = array<i32>} : memref<8x1xf32, #tpu.memory_space<vmem>>, vector<8x1xf32>,
    %c0_190 = arith.constant 0 : index
    %c0_191 = arith.constant 0 : index
    %603 = vector.load %arg10[%c0_190, %c0_191] : memref<8x30xf32, #tpu.memory_space<vmem>>, vector<8x30xf32>
    tpu.vector_store %arg10[%c0_190, %c0_191], %9 {strides = array<i32>} : memref<8x30xf32, #tpu.memory_space<vmem>>, vector<8x30xf32>,
    return
  }
}

</mosaic_0001>

<bundles_post_ra>
// kernel: _forward.1
= control target key start
LH: loop header
LB: loop body
LE: loop exit
PB: predicated region body
PF: predicated region fallthrough
CT: control target
= control target key end

     0   :  { %vm45_vm0 = vcmask 1045504   ;;  %v1171_v3 = vmov 0.0|0.0   ;;  %vm1172_vm1 = vmmov 0   ;;  %v1173_v6 = vmov 0.0   ;;  %s1450_s0 = inlined_call_operand.vmem [shape: f32[8,1], index: 0, kind: input, shape index: {}]   ;;  %s1451_s1 = inlined_call_operand.vmem [shape: f32[8,30], index: 1, kind: input, shape index: {}]   ;;  %s1452_s2 = inlined_call_operand.vmem [shape: f32[8,30], index: 2, kind: input, shape index: {}]   ;;  %s1453_s3 = inlined_call_operand.vmem [shape: f32[30,30], index: 3, kind: input, shape index: {}]   ;;  %s1454_s4 = inlined_call_operand.vmem [shape: f32[1,30], index: 4, kind: input, shape index: {}]   ;;  %s1455_s5 = inlined_call_operand.vmem [shape: f32[30,30], index: 5, kind: input, shape index: {}]   ;;  %s1456_s6 = inlined_call_operand.vmem [shape: f32[30,50], index: 6, kind: input, shape index: {}]   ;;  %s1457_s7 = inlined_call_operand.vmem [shape: f32[50,50], index: 7, kind: input, shape index: {}]   ;;  %s1458_s8 = inlined_call_operand.vmem [shape: f32[50,30], index: 8, kind: input, shape index: {}]   ;;  %s1459_s9 = inlined_call_operand.vmem [shape: f32[8,1], index: 9, kind: output, shape index: {0}]   ;;  %s1460_s10 = inlined_call_operand.hbm [shape: f32[8,30], index: 10, kind: output, shape index: {1}]  }
   0x1   :  { %v37_v0 = vld [vmem:[%s1453_s3] sm:$0xff]  ;;  %v38_v1 = vld [vmem:[%s1453_s3 + $0x8] sm:$0xff]  ;;  %v39_v2 = vld [vmem:[%s1453_s3 + $0x10] sm:$0xff]  ;;  %1058 = vmatprep.subr.bf16.mxu0 %v1171_v3  ;;  %1072 = vmatprep.subr.bf16.mxu1 %v1171_v3  ;;  %vm1174_vm2 = vmmov 1  }
   0x2   :  { %v1059_v4 = vpack.c.bf16 %v38_v1, %v37_v0  ;;  %v40_v5 = vld [vmem:[%s1453_s3 + $0x18] sm:$0x3f]  ;;  %999 = vmatprep.mubr.msk.f32.mxu0 %vm1172_vm1, %v1173_v6  ;;  %1021 = vmatprep.mubr.msk.f32.mxu1 %vm1172_vm1, %v1173_v6  ;;  %vm1249_vm3 = vmpackc.low %vm45_vm0, %vm1174_vm2  ;;  %v120_v9 = vld [vmem:[%s1455_s5] sm:$0xff] }
   0x3   :  { %v1062_v7 = vpack.c.bf16 %v40_v5, %v39_v2  ;;  %v208_v10 = vld [vmem:[%s1456_s6] sm:$0xff]  ;;  %v121_v11 = vld [vmem:[%s1455_s5 + $0x8] sm:$0xff] }
   0x4   :  { %1060 = vmatpush3.bf16.msra.mxu0 %v1059_v4  ;;  %v209_v12 = vld [vmem:[%s1456_s6 + $0x8] sm:$0xff] }
   0x5   :  { %1061 = vmatprep.subr.bf16.mxu0 %v1171_v3 }
   0x6   :  { %16 = vsyncpa [#allocation3], 0  ;;  %v1073_v13 = vpack.c.bf16 %v209_v12, %v208_v10  ;;  %v36_v14 = vld [vmem:[%s1452_s2] sm:$0xff]  ;;  %vm41_vm4 = vcmask 244736   ;;  %v1066_v15 = vpack.c.bf16 %v121_v11, %v120_v9  ;;  %v122_v16 = vld [vmem:[%s1455_s5 + $0x10] sm:$0xff]  ;;  %vm300_vm5 = vcmask 1041408  }
   0x7   :  { %v123_v17 = vld [vmem:[%s1455_s5 + $0x18] sm:$0x3f]  ;;  %v35_v19 = vld [vmem:[%s1451_s1] sm:$0xff]  ;;  %v210_v20 = vld [vmem:[%s1456_s6 + $0x10] sm:$0xff]  ;;  %vm296_vm6 = vcmask 408576  }
   0x8   :  { %1064 = vmatpush3.bf16.msk.msra.mxu0 %vm1249_vm3, %v1062_v7  ;;  %1074 = vmatpush3.bf16.msra.mxu1 %v1073_v13  ;;  %v1069_v18 = vpack.c.bf16 %v123_v17, %v122_v16  ;;  %v211_v21 = vld [vmem:[%s1456_s6 + $0x18] sm:$0x3f]  ;;  %v289_v23 = vld [vmem:[%s1457_s7] sm:$0xff]  ;;  %v290_v24 = vld [vmem:[%s1457_s7 + $0x8] sm:$0xff] }
   0x9   :  { %1065 = vmatprep.subr.bf16.mxu0 %v1171_v3  ;;  %1075 = vmatprep.subr.bf16.mxu1 %v1171_v3  ;;  %v1076_v22 = vpack.c.bf16 %v211_v21, %v210_v20  ;;  %v937_v25 = vld [vmem:[%s1454_s4] ss:$0 sm:$0xff]  ;;  %v1080_v27 = vpack.c.bf16 %v290_v24, %v289_v23  ;;  %v291_v30 = vld [vmem:[%s1457_s7 + $0x10] sm:$0xff]  ;;  %v292_v31 = vld [vmem:[%s1457_s7 + $0x18] sm:$0xff] }
   0xa   :  { %v1083_v32 = vpack.c.bf16 %v292_v31, %v291_v30  ;;  %v293_v33 = vld [vmem:[%s1457_s7 + $0x20] sm:$0xff]  ;;  %v294_v34 = vld [vmem:[%s1457_s7 + $0x28] sm:$0xff]  ;;  %v295_v36 = vld [vmem:[%s1457_s7 + $0x30] sm:$0x3] }
   0xb   :  { %1000 = vmatmul.mubr.msk.f32.vlgmr.msra.gmra.mrb[0].mxu0 %vm41_vm4, %v36_v14  ;;  %v1086_v35 = vpack.c.bf16 %v294_v34, %v293_v33  ;;  %v375_v37 = vld [vmem:[%s1458_s8] sm:$0xff]  ;;  %v376_v38 = vld [vmem:[%s1458_s8 + $0x8] sm:$0xff]  ;;  %v377_v43 = vld [vmem:[%s1458_s8 + $0x10] sm:$0xff] }
   0xc   :  { %1067 = vmatpush3.bf16.msra.mxu0 %v1066_v15  ;;  %1010 = vmatprep.mubr.msk.f32.mxu0 %vm1172_vm1, %v1173_v6  ;;  %v1089_v39 = vpack.c.bf16 %v376_v38, %v375_v37  ;;  %v378_v44 = vld [vmem:[%s1458_s8 + $0x18] sm:$0xff]  ;;  %v379_v46 = vld [vmem:[%s1458_s8 + $0x20] sm:$0xff]  ;;  %v380_v47 = vld [vmem:[%s1458_s8 + $0x28] sm:$0xff] }
   0xd   :  { %1068 = vmatprep.subr.bf16.mxu0 %v1171_v3  ;;  %1078 = vmatpush3.bf16.msk.msra.mxu1 %vm1249_vm3, %v1076_v22  ;;  %v1092_v45 = vpack.c.bf16 %v378_v44, %v377_v43  ;;  %v1095_v48 = vpack.c.bf16 %v380_v47, %v379_v46  ;;  %v381_v49 = vld [vmem:[%s1458_s8 + $0x30] sm:$0x3]  ;;  %s1175_s8 = smov [#allocation2]  }
   0xe   :  { %1079 = vmatprep.subr.bf16.mxu1 %v1171_v3  ;;  %s923_s20 = sshll.u32 %s1175_s8, 4  ;;  %s924_s20 = int_to_ptr.vmem [resolvable:$true] %s923_s20 }
   0xf   :  { %s1147_s21 = scalar_lea.vmem %s924_s20, 128  ;;  %p1152_p1 = scmp.lt.s32.totalorder %s924_s20, %s924_s20 }
  0x10   :  { %1071 = vmatpush3.bf16.msk.msra.mxu0 %vm1249_vm3, %v1069_v18  ;;  %p1148_p0 = scmp.ne.s32.totalorder %s924_s20, %s1147_s21  ;;  %p1153_p2 = scmp.lt.s32.totalorder %s1147_s21, %s1147_s21 }
  0x11   :  { %1088 = vmatprep.subr.bf16.mxu0 %v1171_v3 }
  0x12   :  { %p1154_p3 = por %p1153_p2, %p1152_p1 }
  0x13   :  { %1011 = vmatmul.mubr.msk.f32.vlgmr.msra.gmra.mrb[0].mxu0 %vm41_vm4, %v35_v19 }
  0x14   :  { %1055 = vmatprep.mubr.msk.f32.mxu0 %vm1172_vm1, %v1173_v6  ;;  %1090 = vmatpush3.bf16.msra.mxu0 %v1089_v39  ;;  %p1155_p4 = pnand %p1154_p3, %p1148_p0 }
  0x15   :  { %1091 = vmatprep.subr.bf16.mxu0 %v1171_v3 }
  0x18   :  { %1093 = vmatpush3.bf16.msra.mxu0 %v1092_v45 }
  0x19   :  { %1094 = vmatprep.subr.bf16.mxu0 %v1171_v3 }
  0x1c   :  { %1096 = vmatpush3.bf16.msra.mxu0 %v1095_v48 }
  0x1d   :  { %1053 = vmatprep.subr.mxu0 %v1173_v6 }
  0x20   :  { %1054 = vmatpush3.msk.msra.mxu0 %vm300_vm5, %v381_v49 }
  0xe6   :  { %v196_v26 = vpop.f32.mrb[0].mxu0 }
  0xe7   :  { %v1310_v28 = vadd.f32 %v937_v25, %v196_v26  ;;  %v1012_v29 = vpop.f32.mrb[1].mxu0 }
  0xe9   :  { %914 = vst.msk [vmem:[#allocation2] sm:$0xff] %vm41_vm4, %v1310_v28  ;;  %1022 = vmatmul.mubr.msk.f32.vlgmr.msra.gmra.mrb[0].mxu1 %vm41_vm4, %v1310_v28 }
  0xea   :  { %1081 = vmatpush3.bf16.msra.mxu1 %v1080_v27  ;;  %1038 = vmatprep.mubr.msk.f32.mxu1 %vm1172_vm1, %v1173_v6 }
  0xeb   :  { %1082 = vmatprep.subr.bf16.mxu1 %v1171_v3 }
  0xee   :  { %1084 = vmatpush3.bf16.msra.mxu1 %v1083_v32 }
  0xef   :  { %1085 = vmatprep.subr.bf16.mxu1 %v1171_v3 }
  0xf2   :  { %1087 = vmatpush3.bf16.msra.mxu1 %v1086_v35 }
  0xf3   :  { %1036 = vmatprep.subr.mxu1 %v1173_v6 }
  0xf6   :  { %1037 = vmatpush3.msk.msra.mxu1 %vm300_vm5, %v295_v36 }
 0x1bc   :  { %v284_v40 = vpop.f32.mrb[0].mxu1 }
 0x1bd   :  { %1105 = vtanh.f32 %v284_v40  ;;  %v1023_v41 = vpop.f32.mrb[1].mxu1 }
 0x1c7   :  { %v1106_v42 = vpop.eup %1105 }
 0x1c8   :  { %1039 = vmatmul.mubr.msk.f32.vlgmr.msra.gmra.mrb[2].mxu1 %vm296_vm6, %v1106_v42 }
 0x29b   :  { %v370_v50 = vpop.f32.mrb[2].mxu1 }
 0x29c   :  { %1107 = vtanh.f32 %v370_v50  ;;  %v1040_v51 = vpop.f32.mrb[3].mxu1 }
 0x2a6   :  { %v1108_v52 = vpop.eup %1107 }
 0x2a7   :  { %1056 = vmatmul.mubr.msk.f32.vlgmr.msra.gmra.mrb[2].mxu0 %vm296_vm6, %v1108_v52 }
 0x37a   :  { %v454_v53 = vpop.f32.mrb[2].mxu0 }
 0x37b   :  { %1109 = vtanh.f32 %v454_v53  ;;  %v1057_v54 = vpop.f32.mrb[3].mxu0 }
 0x385   :  { %v1110_v55 = vpop.eup %1109 }
 0x386   :  { %v459_v56 = vsel %vm41_vm4, %v1110_v55, -inf }
 0x387   :  { %460 = vmax.xlane.f32.xlu0 %v459_v56 }
 0x414   :  { %v461_v57 = vpop.xlane.xlu0 %460 }
 0x415   :  { %v462_v58 = vsub.f32 %v1110_v55, %v461_v57 }
 0x417   :  { %v463_v59 = vmul.f32 1.442695, %v462_v58 }
 0x419   :  { %1111 = vpow2.f32 %v463_v59 }
 0x423   :  { %v1112_v60 = vpop.eup %1111 }
 0x424   :  { %v465_v61 = vsel %vm41_vm4, %v1112_v60, 0.0 }
 0x425   :  { %466 = vadd.xlane.f32.xlu0 %v465_v61 }
 0x4b2   :  { %v467_v62 = vpop.xlane.xlu0 %466 }
 0x4b3   :  { %1113 = vrcp.f32 %v467_v62 }
 0x4bd   :  { %v1114_v63 = vpop.eup %1113 }
 0x4be   :  { %v469_v0 = vmul.f32 %v1114_v63, %v1112_v60 }
 0x4c0   :  { %v470_v1 = vmax.f32 %v469_v0, 0.0 }
 0x4c2   :  { %v471_v2 = vmin.f32 %v470_v1, 0.08 }
 0x4c4   :  { %vm472_vm7 = vcmp.ne.f32.partialorder %v471_v2, 0.08  ;;  %v476_v7 = vsub.f32 %v469_v0, %v471_v2 }
 0x4c5   :  { %v944_v3 = vsel %vm472_vm7, 1.0, %v1173_v6 }
 0x4c6   :  { %v475_v4 = vmul.f32 %v944_v3, %v471_v2  ;;  %v477_v8 = vsel %vm41_vm4, %v476_v7, 0.0 }
 0x4c8   :  { %v480_v5 = vsel %vm41_vm4, %v475_v4, 0.0 }
 0x4c9   :  { %481 = vadd.xlane.f32.xlu1 %v480_v5 }
 0x4cd   :  { %478 = vadd.xlane.f32.xlu1 %v477_v8 }
 0x556   :  { %v482_v9 = vpop.xlane.xlu1 %481 }
 0x557   :  { %vm483_vm8 = vcmp.eq.f32.partialorder %v482_v9, 0.0 }
 0x558   :  { %v484_v10 = vsel %vm483_vm8, 1.0, %v482_v9 }
 0x559   :  { %1115 = vrcp.f32 %v484_v10 }
 0x55a   :  { %v479_v12 = vpop.xlane.xlu1 %478 }
 0x563   :  { %v1116_v11 = vpop.eup %1115 }
 0x564   :  { %v486_v13 = vmul.f32 %v1116_v11, %v479_v12 }
 0x566   :  { %v487_v14 = vsel %vm483_vm8, 0.0, %v486_v13 }
 0x567   :  { %v488_v15 = vmul.f32 %v487_v14, %v475_v4 }
 0x569   :  { %v489_v16 = vadd.f32 %v488_v15, %v471_v2 }
 0x56b   :  { %v490_v17 = vsel %vm41_vm4, %v489_v16, -inf  ;;  %v494_v18 = vmax.f32 %v489_v16, 0.0 }
 0x56c   :  { %491 = vmax.xlane.f32.xlu0 %v490_v17 }
 0x56d   :  { %v495_v19 = vmin.f32 %v494_v18, 0.08 }
 0x5f9   :  { %v492_v20 = vpop.xlane.xlu0 %491 }
 0x5fa   :  { %vm493_vm9 = vcmp.gt.f32.partialorder %v492_v20, 0.08 }
 0x5fb   :  { %v498_v21 = vsel %vm493_vm9, %v495_v19, %v489_v16 }
 0x5fc   :  { %v503_v22 = vsub.f32 %v489_v16, %v498_v21  ;;  %vm499_vm10 = vcmp.ne.f32.partialorder %v498_v21, 0.08 }
 0x5fd   :  { %v945_v23 = vsel %vm499_vm10, 1.0, %v1173_v6 }
 0x5fe   :  { %v504_v24 = vsel %vm41_vm4, %v503_v22, 0.0  ;;  %v502_v25 = vmul.f32 %v945_v23, %v498_v21 }
 0x5ff   :  { %505 = vadd.xlane.f32.xlu0 %v504_v24 }
 0x600   :  { %v507_v26 = vsel %vm41_vm4, %v502_v25, 0.0 }
 0x601   :  { %508 = vadd.xlane.f32.xlu1 %v507_v26 }
 0x68c   :  { %v506_v31 = vpop.xlane.xlu0 %505 }
 0x68e   :  { %v509_v27 = vpop.xlane.xlu1 %508 }
 0x68f   :  { %vm510_vm11 = vcmp.eq.f32.partialorder %v509_v27, 0.0 }
 0x690   :  { %v511_v29 = vsel %vm510_vm11, 1.0, %v509_v27 }
 0x691   :  { %1117 = vrcp.f32 %v511_v29 }
 0x69b   :  { %v1118_v30 = vpop.eup %1117 }
 0x69c   :  { %v513_v32 = vmul.f32 %v1118_v30, %v506_v31 }
 0x69e   :  { %v514_v33 = vsel %vm510_vm11, 0.0, %v513_v32 }
 0x69f   :  { %v515_v34 = vmul.f32 %v514_v33, %v502_v25 }
 0x6a1   :  { %v516_v35 = vadd.f32 %v515_v34, %v498_v21 }
 0x6a3   :  { %v517_v36 = vsel %vm41_vm4, %v516_v35, -inf  ;;  %v521_v37 = vmax.f32 %v516_v35, 0.0 }
 0x6a4   :  { %518 = vmax.xlane.f32.xlu1 %v517_v36 }
 0x6a5   :  { %v522_v38 = vmin.f32 %v521_v37, 0.08 }
 0x731   :  { %v519_v39 = vpop.xlane.xlu1 %518 }
 0x732   :  { %vm520_vm12 = vcmp.gt.f32.partialorder %v519_v39, 0.08 }
 0x733   :  { %v525_v40 = vsel %vm520_vm12, %v522_v38, %v516_v35 }
 0x734   :  { %v530_v41 = vsub.f32 %v516_v35, %v525_v40  ;;  %vm526_vm13 = vcmp.ne.f32.partialorder %v525_v40, 0.08 }
 0x735   :  { %v946_v42 = vsel %vm526_vm13, 1.0, %v1173_v6 }
 0x736   :  { %v531_v43 = vsel %vm41_vm4, %v530_v41, 0.0  ;;  %v529_v44 = vmul.f32 %v946_v42, %v525_v40 }
 0x737   :  { %532 = vadd.xlane.f32.xlu1 %v531_v43 }
 0x738   :  { %v534_v45 = vsel %vm41_vm4, %v529_v44, 0.0 }
 0x739   :  { %535 = vadd.xlane.f32.xlu0 %v534_v45 }
 0x7c4   :  { %v533_v49 = vpop.xlane.xlu1 %532 }
 0x7c6   :  { %v536_v46 = vpop.xlane.xlu0 %535 }
 0x7c7   :  { %vm537_vm14 = vcmp.eq.f32.partialorder %v536_v46, 0.0 }
 0x7c8   :  { %v538_v47 = vsel %vm537_vm14, 1.0, %v536_v46 }
 0x7c9   :  { %1119 = vrcp.f32 %v538_v47 }
 0x7d3   :  { %v1120_v48 = vpop.eup %1119 }
 0x7d4   :  { %v540_v50 = vmul.f32 %v1120_v48, %v533_v49 }
 0x7d6   :  { %v541_v51 = vsel %vm537_vm14, 0.0, %v540_v50 }
 0x7d7   :  { %v542_v52 = vmul.f32 %v541_v51, %v529_v44 }
 0x7d9   :  { %v543_v53 = vadd.f32 %v542_v52, %v525_v40 }
 0x7db   :  { %v544_v54 = vsel %vm41_vm4, %v543_v53, -inf  ;;  %v548_v55 = vmax.f32 %v543_v53, 0.0 }
 0x7dc   :  { %545 = vmax.xlane.f32.xlu0 %v544_v54 }
 0x7dd   :  { %v549_v56 = vmin.f32 %v548_v55, 0.08 }
 0x869   :  { %v546_v57 = vpop.xlane.xlu0 %545 }
 0x86a   :  { %vm547_vm15 = vcmp.gt.f32.partialorder %v546_v57, 0.08 }
 0x86b   :  { %v552_v58 = vsel %vm547_vm15, %v549_v56, %v543_v53 }
 0x86c   :  { %v557_v59 = vsub.f32 %v543_v53, %v552_v58  ;;  %vm553_vm0 = vcmp.ne.f32.partialorder %v552_v58, 0.08 }
 0x86d   :  { %v947_v60 = vsel %vm553_vm0, 1.0, %v1173_v6 }
 0x86e   :  { %v558_v61 = vsel %vm41_vm4, %v557_v59, 0.0  ;;  %v556_v62 = vmul.f32 %v947_v60, %v552_v58 }
 0x86f   :  { %559 = vadd.xlane.f32.xlu0 %v558_v61 }
 0x870   :  { %v561_v63 = vsel %vm41_vm4, %v556_v62, 0.0 }
 0x871   :  { %562 = vadd.xlane.f32.xlu1 %v561_v63 }
 0x8fc   :  { %v560_v3 = vpop.xlane.xlu0 %559 }
 0x8fe   :  { %v563_v0 = vpop.xlane.xlu1 %562 }
 0x8ff   :  { %vm564_vm1 = vcmp.eq.f32.partialorder %v563_v0, 0.0 }
 0x900   :  { %v565_v1 = vsel %vm564_vm1, 1.0, %v563_v0 }
 0x901   :  { %1121 = vrcp.f32 %v565_v1 }
 0x90b   :  { %v1122_v2 = vpop.eup %1121 }
 0x90c   :  { %v567_v4 = vmul.f32 %v1122_v2, %v560_v3 }
 0x90e   :  { %v568_v5 = vsel %vm564_vm1, 0.0, %v567_v4 }
 0x90f   :  { %v569_v7 = vmul.f32 %v568_v5, %v556_v62 }
 0x911   :  { %v570_v8 = vadd.f32 %v569_v7, %v552_v58 }
 0x913   :  { %v571_v9 = vsel %vm41_vm4, %v570_v8, -inf  ;;  %v575_v10 = vmax.f32 %v570_v8, 0.0 }
 0x914   :  { %572 = vmax.xlane.f32.xlu1 %v571_v9 }
 0x915   :  { %v576_v11 = vmin.f32 %v575_v10, 0.08 }
 0x9a1   :  { %v573_v12 = vpop.xlane.xlu1 %572 }
 0x9a2   :  { %vm574_vm2 = vcmp.gt.f32.partialorder %v573_v12, 0.08 }
 0x9a3   :  { %v579_v13 = vsel %vm574_vm2, %v576_v11, %v570_v8 }
 0x9a4   :  { %v584_v14 = vsub.f32 %v570_v8, %v579_v13  ;;  %vm580_vm3 = vcmp.ne.f32.partialorder %v579_v13, 0.08 }
 0x9a5   :  { %v948_v15 = vsel %vm580_vm3, 1.0, %v1173_v6 }
 0x9a6   :  { %v585_v16 = vsel %vm41_vm4, %v584_v14, 0.0  ;;  %v583_v17 = vmul.f32 %v948_v15, %v579_v13 }
 0x9a7   :  { %586 = vadd.xlane.f32.xlu1 %v585_v16 }
 0x9a8   :  { %v588_v18 = vsel %vm41_vm4, %v583_v17, 0.0 }
 0x9a9   :  { %589 = vadd.xlane.f32.xlu0 %v588_v18 }
 0xa34   :  { %v587_v22 = vpop.xlane.xlu1 %586 }
 0xa36   :  { %v590_v19 = vpop.xlane.xlu0 %589 }
 0xa37   :  { %vm591_vm5 = vcmp.eq.f32.partialorder %v590_v19, 0.0 }
 0xa38   :  { %v592_v20 = vsel %vm591_vm5, 1.0, %v590_v19 }
 0xa39   :  { %1123 = vrcp.f32 %v592_v20 }
 0xa43   :  { %v1124_v21 = vpop.eup %1123 }
 0xa44   :  { %v594_v23 = vmul.f32 %v1124_v21, %v587_v22 }
 0xa46   :  { %v595_v24 = vsel %vm591_vm5, 0.0, %v594_v23 }
 0xa47   :  { %v596_v25 = vmul.f32 %v595_v24, %v583_v17 }
 0xa49   :  { %v597_v26 = vadd.f32 %v596_v25, %v579_v13 }
 0xa4b   :  { %v598_v27 = vsel %vm41_vm4, %v597_v26, -inf  ;;  %v602_v29 = vmax.f32 %v597_v26, 0.0 }
 0xa4c   :  { %599 = vmax.xlane.f32.xlu0 %v598_v27 }
 0xa4d   :  { %v603_v30 = vmin.f32 %v602_v29, 0.08 }
 0xad9   :  { %v600_v31 = vpop.xlane.xlu0 %599 }
 0xada   :  { %vm601_vm6 = vcmp.gt.f32.partialorder %v600_v31, 0.08 }
 0xadb   :  { %v606_v32 = vsel %vm601_vm6, %v603_v30, %v597_v26 }
 0xadc   :  { %v611_v33 = vsub.f32 %v597_v26, %v606_v32  ;;  %vm607_vm7 = vcmp.ne.f32.partialorder %v606_v32, 0.08 }
 0xadd   :  { %v949_v34 = vsel %vm607_vm7, 1.0, %v1173_v6 }
 0xade   :  { %v612_v35 = vsel %vm41_vm4, %v611_v33, 0.0  ;;  %v610_v36 = vmul.f32 %v949_v34, %v606_v32 }
 0xadf   :  { %613 = vadd.xlane.f32.xlu0 %v612_v35 }
 0xae0   :  { %v615_v37 = vsel %vm41_vm4, %v610_v36, 0.0 }
 0xae1   :  { %616 = vadd.xlane.f32.xlu1 %v615_v37 }
 0xb6c   :  { %v614_v41 = vpop.xlane.xlu0 %613 }
 0xb6e   :  { %v617_v38 = vpop.xlane.xlu1 %616 }
 0xb6f   :  { %vm618_vm8 = vcmp.eq.f32.partialorder %v617_v38, 0.0 }
 0xb70   :  { %v619_v39 = vsel %vm618_vm8, 1.0, %v617_v38 }
 0xb71   :  { %1125 = vrcp.f32 %v619_v39 }
 0xb7b   :  { %v1126_v40 = vpop.eup %1125 }
 0xb7c   :  { %v621_v42 = vmul.f32 %v1126_v40, %v614_v41 }
 0xb7e   :  { %v622_v43 = vsel %vm618_vm8, 0.0, %v621_v42 }
 0xb7f   :  { %v623_v44 = vmul.f32 %v622_v43, %v610_v36 }
 0xb81   :  { %v624_v45 = vadd.f32 %v623_v44, %v606_v32 }
 0xb83   :  { %v625_v46 = vsel %vm41_vm4, %v624_v45, -inf  ;;  %v629_v47 = vmax.f32 %v624_v45, 0.0 }
 0xb84   :  { %626 = vmax.xlane.f32.xlu1 %v625_v46 }
 0xb85   :  { %v630_v48 = vmin.f32 %v629_v47, 0.08 }
 0xc11   :  { %v627_v49 = vpop.xlane.xlu1 %626 }
 0xc12   :  { %vm628_vm9 = vcmp.gt.f32.partialorder %v627_v49, 0.08 }
 0xc13   :  { %v633_v50 = vsel %vm628_vm9, %v630_v48, %v624_v45 }
 0xc14   :  { %v638_v51 = vsub.f32 %v624_v45, %v633_v50  ;;  %vm634_vm10 = vcmp.ne.f32.partialorder %v633_v50, 0.08 }
 0xc15   :  { %v950_v52 = vsel %vm634_vm10, 1.0, %v1173_v6 }
 0xc16   :  { %v639_v53 = vsel %vm41_vm4, %v638_v51, 0.0  ;;  %v637_v54 = vmul.f32 %v950_v52, %v633_v50 }
 0xc17   :  { %640 = vadd.xlane.f32.xlu1 %v639_v53 }
 0xc18   :  { %v642_v55 = vsel %vm41_vm4, %v637_v54, 0.0 }
 0xc19   :  { %643 = vadd.xlane.f32.xlu0 %v642_v55 }
 0xca4   :  { %v641_v59 = vpop.xlane.xlu1 %640 }
 0xca6   :  { %v644_v56 = vpop.xlane.xlu0 %643 }
 0xca7   :  { %vm645_vm11 = vcmp.eq.f32.partialorder %v644_v56, 0.0 }
 0xca8   :  { %v646_v57 = vsel %vm645_vm11, 1.0, %v644_v56 }
 0xca9   :  { %1127 = vrcp.f32 %v646_v57 }
 0xcb3   :  { %v1128_v58 = vpop.eup %1127 }
 0xcb4   :  { %v648_v60 = vmul.f32 %v1128_v58, %v641_v59 }
 0xcb6   :  { %v649_v61 = vsel %vm645_vm11, 0.0, %v648_v60 }
 0xcb7   :  { %v650_v62 = vmul.f32 %v649_v61, %v637_v54 }
 0xcb9   :  { %v651_v63 = vadd.f32 %v650_v62, %v633_v50 }
 0xcbb   :  { %v652_v0 = vsel %vm41_vm4, %v651_v63, -inf  ;;  %v656_v1 = vmax.f32 %v651_v63, 0.0 }
 0xcbc   :  { %653 = vmax.xlane.f32.xlu0 %v652_v0 }
 0xcbd   :  { %v657_v2 = vmin.f32 %v656_v1, 0.08 }
 0xd49   :  { %v654_v3 = vpop.xlane.xlu0 %653 }
 0xd4a   :  { %vm655_vm12 = vcmp.gt.f32.partialorder %v654_v3, 0.08 }
 0xd4b   :  { %v660_v4 = vsel %vm655_vm12, %v657_v2, %v651_v63 }
 0xd4c   :  { %v665_v5 = vsub.f32 %v651_v63, %v660_v4  ;;  %vm661_vm13 = vcmp.ne.f32.partialorder %v660_v4, 0.08 }
 0xd4d   :  { %v951_v7 = vsel %vm661_vm13, 1.0, %v1173_v6 }
 0xd4e   :  { %v666_v8 = vsel %vm41_vm4, %v665_v5, 0.0  ;;  %v664_v9 = vmul.f32 %v951_v7, %v660_v4 }
 0xd4f   :  { %667 = vadd.xlane.f32.xlu0 %v666_v8 }
 0xd50   :  { %v669_v10 = vsel %vm41_vm4, %v664_v9, 0.0 }
 0xd51   :  { %670 = vadd.xlane.f32.xlu1 %v669_v10 }
 0xddc   :  { %v668_v14 = vpop.xlane.xlu0 %667 }
 0xdde   :  { %v671_v11 = vpop.xlane.xlu1 %670 }
 0xddf   :  { %vm672_vm14 = vcmp.eq.f32.partialorder %v671_v11, 0.0 }
 0xde0   :  { %v673_v12 = vsel %vm672_vm14, 1.0, %v671_v11 }
 0xde1   :  { %1129 = vrcp.f32 %v673_v12 }
 0xdeb   :  { %v1130_v13 = vpop.eup %1129 }
 0xdec   :  { %v675_v15 = vmul.f32 %v1130_v13, %v668_v14 }
 0xdee   :  { %v676_v16 = vsel %vm672_vm14, 0.0, %v675_v15 }
 0xdef   :  { %v677_v17 = vmul.f32 %v676_v16, %v664_v9 }
 0xdf1   :  { %v678_v18 = vadd.f32 %v677_v17, %v660_v4 }
 0xdf3   :  { %v679_v19 = vsel %vm41_vm4, %v678_v18, -inf  ;;  %v683_v20 = vmax.f32 %v678_v18, 0.0 }
 0xdf4   :  { %680 = vmax.xlane.f32.xlu1 %v679_v19 }
 0xdf5   :  { %v684_v21 = vmin.f32 %v683_v20, 0.08 }
 0xe81   :  { %v681_v22 = vpop.xlane.xlu1 %680 }
 0xe82   :  { %vm682_vm15 = vcmp.gt.f32.partialorder %v681_v22, 0.08 }
 0xe83   :  { %v687_v23 = vsel %vm682_vm15, %v684_v21, %v678_v18 }
 0xe84   :  { %v692_v24 = vsub.f32 %v678_v18, %v687_v23  ;;  %vm688_vm0 = vcmp.ne.f32.partialorder %v687_v23, 0.08 }
 0xe85   :  { %v952_v25 = vsel %vm688_vm0, 1.0, %v1173_v6 }
 0xe86   :  { %v693_v26 = vsel %vm41_vm4, %v692_v24, 0.0  ;;  %v691_v27 = vmul.f32 %v952_v25, %v687_v23 }
 0xe87   :  { %694 = vadd.xlane.f32.xlu1 %v693_v26 }
 0xe88   :  { %v696_v29 = vsel %vm41_vm4, %v691_v27, 0.0 }
 0xe89   :  { %697 = vadd.xlane.f32.xlu0 %v696_v29 }
 0xf14   :  { %v695_v33 = vpop.xlane.xlu1 %694 }
 0xf16   :  { %v698_v30 = vpop.xlane.xlu0 %697 }
 0xf17   :  { %vm699_vm1 = vcmp.eq.f32.partialorder %v698_v30, 0.0 }
 0xf18   :  { %v700_v31 = vsel %vm699_vm1, 1.0, %v698_v30 }
 0xf19   :  { %1131 = vrcp.f32 %v700_v31 }
 0xf23   :  { %v1132_v32 = vpop.eup %1131 }
 0xf24   :  { %v702_v34 = vmul.f32 %v1132_v32, %v695_v33 }
 0xf26   :  { %v703_v35 = vsel %vm699_vm1, 0.0, %v702_v34 }
 0xf27   :  { %v704_v36 = vmul.f32 %v703_v35, %v691_v27 }
 0xf29   :  { %v705_v37 = vadd.f32 %v704_v36, %v687_v23 }
 0xf2b   :  { %v706_v38 = vsel %vm41_vm4, %v705_v37, -inf  ;;  %v710_v39 = vmax.f32 %v705_v37, 0.0 }
 0xf2c   :  { %707 = vmax.xlane.f32.xlu0 %v706_v38 }
 0xf2d   :  { %v711_v40 = vmin.f32 %v710_v39, 0.08 }
 0xfb9   :  { %v708_v41 = vpop.xlane.xlu0 %707 }
 0xfba   :  { %vm709_vm2 = vcmp.gt.f32.partialorder %v708_v41, 0.08 }
 0xfbb   :  { %v714_v42 = vsel %vm709_vm2, %v711_v40, %v705_v37 }
 0xfbc   :  { %v719_v43 = vsub.f32 %v705_v37, %v714_v42  ;;  %vm715_vm3 = vcmp.ne.f32.partialorder %v714_v42, 0.08 }
 0xfbd   :  { %v953_v44 = vsel %vm715_vm3, 1.0, %v1173_v6 }
 0xfbe   :  { %v720_v45 = vsel %vm41_vm4, %v719_v43, 0.0  ;;  %v718_v46 = vmul.f32 %v953_v44, %v714_v42 }
 0xfbf   :  { %721 = vadd.xlane.f32.xlu0 %v720_v45 }
 0xfc0   :  { %v723_v47 = vsel %vm41_vm4, %v718_v46, 0.0 }
 0xfc1   :  { %724 = vadd.xlane.f32.xlu1 %v723_v47 }
0x104c   :  { %v722_v51 = vpop.xlane.xlu0 %721 }
0x104e   :  { %v725_v48 = vpop.xlane.xlu1 %724 }
0x104f   :  { %vm726_vm5 = vcmp.eq.f32.partialorder %v725_v48, 0.0 }
0x1050   :  { %v727_v49 = vsel %vm726_vm5, 1.0, %v725_v48 }
0x1051   :  { %1133 = vrcp.f32 %v727_v49 }
0x105b   :  { %v1134_v50 = vpop.eup %1133 }
0x105c   :  { %v729_v52 = vmul.f32 %v1134_v50, %v722_v51 }
0x105e   :  { %v730_v53 = vsel %vm726_vm5, 0.0, %v729_v52 }
0x105f   :  { %v731_v54 = vmul.f32 %v730_v53, %v718_v46 }
0x1061   :  { %v732_v55 = vadd.f32 %v731_v54, %v714_v42 }
0x1063   :  { %v733_v56 = vsel %vm41_vm4, %v732_v55, -inf  ;;  %v737_v57 = vmax.f32 %v732_v55, 0.0 }
0x1064   :  { %734 = vmax.xlane.f32.xlu1 %v733_v56 }
0x1065   :  { %v738_v58 = vmin.f32 %v737_v57, 0.08 }
0x10f1   :  { %v735_v59 = vpop.xlane.xlu1 %734 }
0x10f2   :  { %vm736_vm6 = vcmp.gt.f32.partialorder %v735_v59, 0.08 }
0x10f3   :  { %v741_v60 = vsel %vm736_vm6, %v738_v58, %v732_v55 }
0x10f4   :  { %v746_v61 = vsub.f32 %v732_v55, %v741_v60  ;;  %vm742_vm7 = vcmp.ne.f32.partialorder %v741_v60, 0.08 }
0x10f5   :  { %v954_v62 = vsel %vm742_vm7, 1.0, %v1173_v6 }
0x10f6   :  { %v747_v63 = vsel %vm41_vm4, %v746_v61, 0.0  ;;  %v745_v0 = vmul.f32 %v954_v62, %v741_v60 }
0x10f7   :  { %748 = vadd.xlane.f32.xlu1 %v747_v63 }
0x10f8   :  { %v750_v1 = vsel %vm41_vm4, %v745_v0, 0.0 }
0x10f9   :  { %751 = vadd.xlane.f32.xlu0 %v750_v1 }
0x1184   :  { %v749_v5 = vpop.xlane.xlu1 %748 }
0x1186   :  { %v752_v2 = vpop.xlane.xlu0 %751 }
0x1187   :  { %vm753_vm8 = vcmp.eq.f32.partialorder %v752_v2, 0.0 }
0x1188   :  { %v754_v3 = vsel %vm753_vm8, 1.0, %v752_v2 }
0x1189   :  { %1135 = vrcp.f32 %v754_v3 }
0x1193   :  { %v1136_v4 = vpop.eup %1135 }
0x1194   :  { %v756_v7 = vmul.f32 %v1136_v4, %v749_v5 }
0x1196   :  { %v757_v8 = vsel %vm753_vm8, 0.0, %v756_v7 }
0x1197   :  { %v758_v9 = vmul.f32 %v757_v8, %v745_v0 }
0x1199   :  { %v759_v10 = vadd.f32 %v758_v9, %v741_v60 }
0x119b   :  { %v760_v11 = vsel %vm41_vm4, %v759_v10, -inf  ;;  %v764_v12 = vmax.f32 %v759_v10, 0.0 }
0x119c   :  { %761 = vmax.xlane.f32.xlu0 %v760_v11 }
0x119d   :  { %v765_v13 = vmin.f32 %v764_v12, 0.08 }
0x1229   :  { %v762_v14 = vpop.xlane.xlu0 %761 }
0x122a   :  { %vm763_vm9 = vcmp.gt.f32.partialorder %v762_v14, 0.08 }
0x122b   :  { %v768_v15 = vsel %vm763_vm9, %v765_v13, %v759_v10 }
0x122c   :  { %v773_v16 = vsub.f32 %v759_v10, %v768_v15  ;;  %vm769_vm10 = vcmp.ne.f32.partialorder %v768_v15, 0.08 }
0x122d   :  { %v955_v17 = vsel %vm769_vm10, 1.0, %v1173_v6 }
0x122e   :  { %v774_v18 = vsel %vm41_vm4, %v773_v16, 0.0  ;;  %v772_v19 = vmul.f32 %v955_v17, %v768_v15 }
0x122f   :  { %775 = vadd.xlane.f32.xlu0 %v774_v18 }
0x1230   :  { %v777_v20 = vsel %vm41_vm4, %v772_v19, 0.0 }
0x1231   :  { %778 = vadd.xlane.f32.xlu1 %v777_v20 }
0x12bc   :  { %v776_v24 = vpop.xlane.xlu0 %775 }
0x12be   :  { %v779_v21 = vpop.xlane.xlu1 %778 }
0x12bf   :  { %vm780_vm11 = vcmp.eq.f32.partialorder %v779_v21, 0.0 }
0x12c0   :  { %v781_v22 = vsel %vm780_vm11, 1.0, %v779_v21 }
0x12c1   :  { %1137 = vrcp.f32 %v781_v22 }
0x12cb   :  { %v1138_v23 = vpop.eup %1137 }
0x12cc   :  { %v783_v25 = vmul.f32 %v1138_v23, %v776_v24 }
0x12ce   :  { %v784_v26 = vsel %vm780_vm11, 0.0, %v783_v25 }
0x12cf   :  { %v785_v27 = vmul.f32 %v784_v26, %v772_v19 }
0x12d1   :  { %v786_v29 = vadd.f32 %v785_v27, %v768_v15 }
0x12d3   :  { %v787_v30 = vsel %vm41_vm4, %v786_v29, -inf  ;;  %v791_v31 = vmax.f32 %v786_v29, 0.0 }
0x12d4   :  { %788 = vmax.xlane.f32.xlu1 %v787_v30 }
0x12d5   :  { %v792_v32 = vmin.f32 %v791_v31, 0.08 }
0x1361   :  { %v789_v33 = vpop.xlane.xlu1 %788 }
0x1362   :  { %vm790_vm12 = vcmp.gt.f32.partialorder %v789_v33, 0.08 }
0x1363   :  { %v795_v34 = vsel %vm790_vm12, %v792_v32, %v786_v29 }
0x1364   :  { %v800_v35 = vsub.f32 %v786_v29, %v795_v34  ;;  %vm796_vm13 = vcmp.ne.f32.partialorder %v795_v34, 0.08 }
0x1365   :  { %v956_v36 = vsel %vm796_vm13, 1.0, %v1173_v6 }
0x1366   :  { %v801_v37 = vsel %vm41_vm4, %v800_v35, 0.0  ;;  %v799_v38 = vmul.f32 %v956_v36, %v795_v34 }
0x1367   :  { %802 = vadd.xlane.f32.xlu1 %v801_v37 }
0x1368   :  { %v804_v39 = vsel %vm41_vm4, %v799_v38, 0.0 }
0x1369   :  { %805 = vadd.xlane.f32.xlu0 %v804_v39 }
0x13f4   :  { %v803_v43 = vpop.xlane.xlu1 %802 }
0x13f6   :  { %v806_v40 = vpop.xlane.xlu0 %805 }
0x13f7   :  { %vm807_vm14 = vcmp.eq.f32.partialorder %v806_v40, 0.0 }
0x13f8   :  { %v808_v41 = vsel %vm807_vm14, 1.0, %v806_v40 }
0x13f9   :  { %1139 = vrcp.f32 %v808_v41 }
0x1403   :  { %v1140_v42 = vpop.eup %1139 }
0x1404   :  { %v810_v44 = vmul.f32 %v1140_v42, %v803_v43  ;;  %v906_v43 = vadd.f32 1.0, %v1310_v28 }
0x1406   :  { %v811_v45 = vsel %vm807_vm14, 0.0, %v810_v44 }
0x1407   :  { %v812_v46 = vmul.f32 %v811_v45, %v799_v38 }
0x1409   :  { %v813_v47 = vadd.f32 %v812_v46, %v795_v34 }
0x140b   :  { %v814_v48 = vsel %vm41_vm4, %v813_v47, -inf  ;;  %v818_v49 = vmax.f32 %v813_v47, 0.0 }
0x140c   :  { %815 = vmax.xlane.f32.xlu0 %v814_v48 }
0x140d   :  { %v819_v50 = vmin.f32 %v818_v49, 0.08 }
0x1499   :  { %v816_v51 = vpop.xlane.xlu0 %815 }
0x149a   :  { %vm817_vm15 = vcmp.gt.f32.partialorder %v816_v51, 0.08 }
0x149b   :  { %v822_v52 = vsel %vm817_vm15, %v819_v50, %v813_v47 }
0x149c   :  { %v827_v53 = vsub.f32 %v813_v47, %v822_v52  ;;  %vm823_vm0 = vcmp.ne.f32.partialorder %v822_v52, 0.08 }
0x149d   :  { %v957_v54 = vsel %vm823_vm0, 1.0, %v1173_v6 }
0x149e   :  { %v828_v55 = vsel %vm41_vm4, %v827_v53, 0.0  ;;  %v826_v56 = vmul.f32 %v957_v54, %v822_v52 }
0x149f   :  { %829 = vadd.xlane.f32.xlu0 %v828_v55 }
0x14a0   :  { %v831_v57 = vsel %vm41_vm4, %v826_v56, 0.0 }
0x14a1   :  { %832 = vadd.xlane.f32.xlu1 %v831_v57 }
0x152c   :  { %v830_v61 = vpop.xlane.xlu0 %829 }
0x152e   :  { %v833_v58 = vpop.xlane.xlu1 %832 }
0x152f   :  { %vm834_vm1 = vcmp.eq.f32.partialorder %v833_v58, 0.0 }
0x1530   :  { %v835_v59 = vsel %vm834_vm1, 1.0, %v833_v58 }
0x1531   :  { %1141 = vrcp.f32 %v835_v59 }
0x153b   :  { %v1142_v60 = vpop.eup %1141 }
0x153c   :  { %v837_v62 = vmul.f32 %v1142_v60, %v830_v61 }
0x153e   :  { %v838_v63 = vsel %vm834_vm1, 0.0, %v837_v62 }
0x153f   :  { %v839_v0 = vmul.f32 %v838_v63, %v826_v56 }
0x1541   :  { %v840_v1 = vadd.f32 %v839_v0, %v822_v52 }
0x1543   :  { %v841_v2 = vsel %vm41_vm4, %v840_v1, -inf  ;;  %v845_v3 = vmax.f32 %v840_v1, 0.0 }
0x1544   :  { %842 = vmax.xlane.f32.xlu1 %v841_v2 }
0x1545   :  { %v846_v4 = vmin.f32 %v845_v3, 0.08 }
0x15d1   :  { %v843_v5 = vpop.xlane.xlu1 %842 }
0x15d2   :  { %vm844_vm2 = vcmp.gt.f32.partialorder %v843_v5, 0.08 }
0x15d3   :  { %v849_v7 = vsel %vm844_vm2, %v846_v4, %v840_v1 }
0x15d4   :  { %v854_v8 = vsub.f32 %v840_v1, %v849_v7  ;;  %vm850_vm3 = vcmp.ne.f32.partialorder %v849_v7, 0.08 }
0x15d5   :  { %v958_v9 = vsel %vm850_vm3, 1.0, %v1173_v6 }
0x15d6   :  { %v855_v10 = vsel %vm41_vm4, %v854_v8, 0.0  ;;  %v853_v11 = vmul.f32 %v958_v9, %v849_v7 }
0x15d7   :  { %856 = vadd.xlane.f32.xlu1 %v855_v10 }
0x15d8   :  { %v858_v12 = vsel %vm41_vm4, %v853_v11, 0.0 }
0x15d9   :  { %859 = vadd.xlane.f32.xlu0 %v858_v12 }
0x1664   :  { %v857_v16 = vpop.xlane.xlu1 %856 }
0x1666   :  { %v860_v13 = vpop.xlane.xlu0 %859 }
0x1667   :  { %vm861_vm5 = vcmp.eq.f32.partialorder %v860_v13, 0.0 }
0x1668   :  { %v862_v14 = vsel %vm861_vm5, 1.0, %v860_v13 }
0x1669   :  { %1143 = vrcp.f32 %v862_v14 }
0x1673   :  { %v1144_v15 = vpop.eup %1143 }
0x1674   :  { %v864_v17 = vmul.f32 %v1144_v15, %v857_v16 }
0x1676   :  { %v865_v18 = vsel %vm861_vm5, 0.0, %v864_v17 }
0x1677   :  { %v866_v19 = vmul.f32 %v865_v18, %v853_v11 }
0x1679   :  { %v867_v20 = vadd.f32 %v866_v19, %v849_v7 }
0x167b   :  { %v868_v21 = vsel %vm41_vm4, %v867_v20, -inf  ;;  %v872_v22 = vmax.f32 %v867_v20, 0.0 }
0x167c   :  { %869 = vmax.xlane.f32.xlu0 %v868_v21 }
0x167d   :  { %v873_v23 = vmin.f32 %v872_v22, 0.08 }
0x1709   :  { %v870_v24 = vpop.xlane.xlu0 %869 }
0x170a   :  { %vm871_vm6 = vcmp.gt.f32.partialorder %v870_v24, 0.08 }
0x170b   :  { %v876_v25 = vsel %vm871_vm6, %v873_v23, %v867_v20 }
0x170c   :  { %v881_v26 = vsub.f32 %v867_v20, %v876_v25  ;;  %vm877_vm7 = vcmp.ne.f32.partialorder %v876_v25, 0.08 }
0x170d   :  { %v959_v27 = vsel %vm877_vm7, 1.0, %v1173_v6 }
0x170e   :  { %v882_v29 = vsel %vm41_vm4, %v881_v26, 0.0  ;;  %v880_v30 = vmul.f32 %v959_v27, %v876_v25 }
0x170f   :  { %883 = vadd.xlane.f32.xlu0 %v882_v29 }
0x1710   :  { %v885_v31 = vsel %vm41_vm4, %v880_v30, 0.0 }
0x1711   :  { %886 = vadd.xlane.f32.xlu1 %v885_v31 }
0x179c   :  { %v884_v35 = vpop.xlane.xlu0 %883 }
0x179e   :  { %v887_v32 = vpop.xlane.xlu1 %886 }
0x179f   :  { %vm888_vm8 = vcmp.eq.f32.partialorder %v887_v32, 0.0 }
0x17a0   :  { %v889_v33 = vsel %vm888_vm8, 1.0, %v887_v32 }
0x17a1   :  { %1145 = vrcp.f32 %v889_v33 }
0x17ab   :  { %v1146_v34 = vpop.eup %1145 }
0x17ac   :  { %v891_v36 = vmul.f32 %v1146_v34, %v884_v35 }
0x17ae   :  { %v892_v37 = vsel %vm888_vm8, 0.0, %v891_v36 }
0x17af   :  { %v893_v38 = vmul.f32 %v892_v37, %v880_v30 }
0x17b1   :  { %v894_v39 = vadd.f32 %v893_v38, %v876_v25 }
0x17b3   :  { %v895_v40 = vsel %vm41_vm4, %v894_v39, -inf  ;;  %v899_v6 = vmax.f32 %v894_v39, 0.0 }
0x17b4   :  { %896 = vmax.xlane.f32.xlu1 %v895_v40 }
0x17b5   :  { %v900_v41 = vmin.f32 %v899_v6, 0.08 }
0x1841   :  { %v897_v42 = vpop.xlane.xlu1 %896 }
0x1842   :  { %vm898_vm9 = vcmp.gt.f32.partialorder %v897_v42, 0.08 }
0x1843   :  { %v903_v44 = vsel %vm898_vm9, %v900_v41, %v894_v39 }
0x1844   :  { %v907_v45 = vmul.f32 %v906_v43, %v903_v44 }
0x1846   :  { %v908_v46 = vsel %vm41_vm4, %v907_v45, 0.0 }
0x1847   :  { %909 = vadd.xlane.f32.xlu0 %v908_v46 }
0x1848   :  { %1158 = shalt.err (!%p1155_p4)
}
0x1849   :  { %s1159_s3 = scalar_lea.hbm %s1460_s10, 128 }
0x184a   :  { %p1160_p5 = scmp.ne.s32.totalorder %s1460_s10, %s1159_s3  ;;  %p1163_p6 = scmp.lt.u32.totalorder %s1159_s3, %s1460_s10 }
0x184c   :  { %p1165_p7 = pnand %p1163_p6, %p1160_p5 }
0x184e   :  { %1168 = shalt.err (!%p1165_p7)
}
0x184f   :  { %926 = dma.vmem_to_hbm [thread:$0]  %s924_s20, 128, %s1460_s10, [#allocation3]   ;;  %v904_v28 = vld [vmem:[%s1450_s0] sm:$0xff]  ;;  %vm912_vm4 = vcmask 7168  }
0x1850   :  { %v905_v47 = vmul.f32 1.03, %v904_v28 }
0x18d4   :  { %v910_v48 = vpop.xlane.xlu0 %909 }
0x18d5   :  { %v911_v49 = vmul.f32 %v910_v48, %v905_v47 }
0x18d7   :  { %913 = vst.msk [vmem:[%s1459_s9] sm:$0xff] %vm912_vm4, %v911_v49 }
0x18d8   :  { %1169 = dma.done.wait [#allocation3], 128  }
0x18d9   :  { %1170 = vsyncadd [#allocation3], 4294967168 }
0x18da   :  { %932 = vsyncpa [#allocation3], 1 }

</bundles_post_ra>
